<compile_context>
chip_gen: v7x
topology: tpu7x:2x2x1
jax: 0.10.0
libtpu: 0.0.40
codegen_flags: <defaults>
</compile_context>

<pallas_src>
import functools

import jax
import jax.numpy as jnp
from jax.experimental import pallas as pl
from jax.experimental.pallas import tpu as pltpu

LN_EPS = 1e-5


def _layernorm(x, w, b):
    # Two-pass variance: numerically safer than E[x^2] - E[x]^2 (LN is not the bottleneck).
    mu = jnp.mean(x, axis=-1, keepdims=True)
    xc = x - mu
    var = jnp.mean(xc * xc, axis=-1, keepdims=True)
    return xc * jax.lax.rsqrt(var + LN_EPS) * w + b


def _gelu_exact(x):
    # PyTorch nn.GELU default (exact, erf-based) -> kept exact for parity.
    return 0.5 * x * (1.0 + jax.lax.erf(x * 0.7071067811865476))


def _softmax_lastdim(s):
    m = jnp.max(s, axis=-1, keepdims=True)
    e = jnp.exp(s - m)
    # Deliberate inference-mode choice: approx reciprocal runs on the idle EUP slot.
    return e * pl.reciprocal(jnp.sum(e, axis=-1, keepdims=True), approx=True)


def block_kernel(x_ref,
                 ln1_w_ref, ln1_b_ref,
                 qkv_w_ref,                       # (C, 3C) bf16, scale folded into Q cols
                 proj_w_ref, proj_b_ref,          # (C, C) bf16, (1, C) f32
                 ln2_w_ref, ln2_b_ref,
                 fc1_w_ref, fc1_b_ref,            # (C, Hm) bf16, (1, Hm) f32
                 fc2_w_ref, fc2_b_ref,            # (Hm, C) bf16, (1, C) f32
                 o_ref,
                 *, num_heads, seq_len):
    m, c = x_ref.shape                            # m = Bt * N rows
    n = seq_len
    bt = m // n
    h = num_heads
    hd = c // h
    f32, bf16 = jnp.float32, jnp.bfloat16

    x2d = x_ref[...]                              # (M, C), already lane/sublane dense

    # ---------------- Attention branch ----------------
    xn = _layernorm(x2d, ln1_w_ref[...], ln1_b_ref[...])
    # ONE full-width (M, C) x (C, 3C) matmul for the fused QKV projection.
    qkv = jnp.dot(xn.astype(bf16), qkv_w_ref[...],
                  preferred_element_type=f32)     # (M, 3C)

    def split_heads(t2d):
        # (M, C) -> (H*Bt, N, hd).  Static per-head lane slices + stack: cheap layout
        # work compared to the MXU passes saved by the fused full-width matmul.
        t2d = t2d.astype(bf16)
        per_head = [t2d[:, i * hd:(i + 1) * hd] for i in range(h)]
        t = jnp.stack(per_head, axis=0)           # (H, M, hd)
        return t.reshape(h * bt, n, hd)           # contiguous: z = head * Bt + b

    q = split_heads(qkv[:, 0 * c:1 * c])          # scale already folded into the weight
    k = split_heads(qkv[:, 1 * c:2 * c])
    v = split_heads(qkv[:, 2 * c:3 * c])

    # Batched over (head, batch-tile); NT contraction over hd (no K transpose needed).
    s = jnp.einsum('zqd,zkd->zqk', q, k, preferred_element_type=f32)   # (H*Bt, N, N)
    p = _softmax_lastdim(s).astype(bf16)
    o = jnp.einsum('zqk,zkd->zqd', p, v, preferred_element_type=f32)   # (H*Bt, N, hd)

    # Head merge (one lane concatenate), then a single full-depth (M, C) x (C, C) proj.
    o = o.reshape(h, m, hd).astype(bf16)          # contiguous reshape back to (H, M, hd)
    ctx = jnp.concatenate([o[i] for i in range(h)], axis=-1)           # (M, C)
    attn = jnp.dot(ctx, proj_w_ref[...], preferred_element_type=f32) + proj_b_ref[...]
    x1 = x2d + attn

    # ---------------- MLP branch ----------------
    xn2 = _layernorm(x1, ln2_w_ref[...], ln2_b_ref[...])
    h1 = jnp.dot(xn2.astype(bf16), fc1_w_ref[...],
                 preferred_element_type=f32) + fc1_b_ref[...]
    g = _gelu_exact(h1)
    mlp = jnp.dot(g.astype(bf16), fc2_w_ref[...],
                  preferred_element_type=f32) + fc2_b_ref[...]

    o_ref[...] = x1 + mlp


def _vmem_budget_and_split_pref():
    """Per-generation VMEM budget + whether to keep >= 2 parallel grid steps."""
    kind = ""
    try:
        kind = jax.devices()[0].device_kind.lower()
    except Exception:
        pass
    if "v7" in kind:
        # 64 MiB physical VMEM, 2 TensorCores -> stay <= ~48 MiB and keep >= 2 steps.
        return 48 * 1024 * 1024, True
    # v5e / v6e: 128 MiB physical, single TC -> big tiles, fewest grid steps.
    return 96 * 1024 * 1024, False


def _step_vmem_bytes(bt, n, c, h, hidden):
    """Rough per-grid-step VMEM estimate (activations + double-buffered I/O blocks)."""
    m = bt * n
    io = 2 * (m * c * 4) * 2                      # x + out blocks, double-buffered
    qkv = m * 3 * c * (4 + 2)                     # f32 qkv + bf16 q/k/v
    scores = bt * h * n * n * (4 + 2)             # f32 scores + bf16 probs
    ctx = m * c * (2 + 4)                         # bf16 ctx + f32 attn out
    mlp = m * hidden * (4 + 4 + 2)                # fc1 out f32, gelu f32, bf16 operand
    resid = 2 * m * c * 4                         # x1 / normalized copies
    return int(1.25 * (io + qkv + scores + ctx + mlp + resid))


def _pick_batch_tile(B, N, C, h, hidden, weight_bytes, budget, keep_two_steps):
    feasible = []
    for bt in range(1, B + 1):
        if B % bt:
            continue
        rows = bt * N
        if rows % 8 != 0 and bt != B:             # (8, 128) sublane rule on (rows, C)
            continue
        if keep_two_steps and B >= 2 and B // bt < 2:
            continue
        if weight_bytes + _step_vmem_bytes(bt, N, C, h, hidden) > budget:
            continue
        feasible.append(bt)
    if not feasible:
        return 1
    for bt in feasible:
        if bt * N >= 512:                         # ~512+ rows/step amortizes step overhead
            return bt
    return feasible[-1]


def _prep_params(params, num_heads):
    """Host-side one-time weight prep: fold attention scale into the Q columns of the
    fused qkv weight, cast matmul weights to bf16, reshape 1-D params to (1, dim) rows."""
    C = params["qkv_w"].shape[0]
    hd = C // num_heads
    scale = hd ** -0.5
    bf16, f32 = jnp.bfloat16, jnp.float32

    qkv_w = jnp.concatenate([params["qkv_w"][:, :C] * scale,
                             params["qkv_w"][:, C:]], axis=1)

    return (
        params["ln1_w"].reshape(1, C).astype(f32),
        params["ln1_b"].reshape(1, C).astype(f32),
        qkv_w.astype(bf16),
        params["proj_w"].astype(bf16),
        params["proj_b"].reshape(1, C).astype(f32),
        params["ln2_w"].reshape(1, C).astype(f32),
        params["ln2_b"].reshape(1, C).astype(f32),
        params["fc1_w"].astype(bf16),
        params["fc1_b"].reshape(1, -1).astype(f32),
        params["fc2_w"].astype(bf16),
        params["fc2_b"].reshape(1, C).astype(f32),
    )


def block_forward(x, params, num_heads):
    B, N, C = x.shape
    weight_args = _prep_params(params, num_heads)
    hidden = int(params["fc1_w"].shape[1])
    weight_bytes = sum(int(w.size) * w.dtype.itemsize for w in weight_args)

    budget, keep_two_steps = _vmem_budget_and_split_pref()
    Bt = _pick_batch_tile(B, N, C, num_heads, hidden, weight_bytes, budget,
                          keep_two_steps)
    rows = Bt * N
    grid = (B // Bt,)
    # TODO(synk): on v7x with B // Bt == 1, add a second "parallel" grid axis over query
    # row-blocks (flash-style split of N) so the second TensorCore gets work.

    x2d = x.reshape(B * N, C)                     # contiguous -> free reshape outside kernel

    def const_spec(a):
        nd = a.ndim
        # Block index never changes across the grid -> single-buffer to save VMEM.
        return pl.BlockSpec(a.shape, lambda i, _nd=nd: (0,) * _nd,
                            pipeline_mode=pl.Buffered(1))

    in_specs = [pl.BlockSpec((rows, C), lambda i: (i, 0))] + \
               [const_spec(w) for w in weight_args]

    kernel = functools.partial(block_kernel, num_heads=num_heads, seq_len=N)

    out2d = pl.pallas_call(
        kernel,
        out_shape=jax.ShapeDtypeStruct((B * N, C), jnp.float32),
        grid_spec=pl.GridSpec(
            grid=grid,
            in_specs=in_specs,
            out_specs=pl.BlockSpec((rows, C), lambda i: (i, 0)),
        ),
        compiler_params=pltpu.CompilerParams(
            dimension_semantics=("parallel",),
            vmem_limit_bytes=budget,
        ),
    )(x2d, *weight_args)
    return out2d.reshape(B, N, C)


def block_reference(x, params, num_heads):
    """Pure-JAX f32 reference matching the PyTorch Block forward."""
    B, N, C = x.shape
    hd = C // num_heads
    scale = hd ** -0.5

    def ln(v, w, b):
        mu = jnp.mean(v, axis=-1, keepdims=True)
        var = jnp.mean((v - mu) ** 2, axis=-1, keepdims=True)
        return (v - mu) / jnp.sqrt(var + LN_EPS) * w + b

    xn = ln(x, params["ln1_w"], params["ln1_b"])
    qkv = xn @ params["qkv_w"]                              # (B, N, 3C)
    qkv = qkv.reshape(B, N, 3, num_heads, hd).transpose(2, 0, 3, 1, 4)
    q, k, v = qkv[0], qkv[1], qkv[2]                        # (B, H, N, hd)
    attn = jnp.einsum("bhqd,bhkd->bhqk", q, k) * scale
    attn = jax.nn.softmax(attn, axis=-1)
    out = jnp.einsum("bhqk,bhkd->bhqd", attn, v)
    out = out.transpose(0, 2, 1, 3).reshape(B, N, C)
    out = out @ params["proj_w"] + params["proj_b"]
    x1 = x + out

    xn2 = ln(x1, params["ln2_w"], params["ln2_b"])
    h = xn2 @ params["fc1_w"] + params["fc1_b"]
    h = 0.5 * h * (1.0 + jax.lax.erf(h * 0.7071067811865476))
    m = h @ params["fc2_w"] + params["fc2_b"]
    return x1 + m


if __name__ == "__main__":
    B, N, C = 2, 8, 32
    num_heads = 4
    mlp_hidden = int(C * 4.0)

    key = jax.random.PRNGKey(0)
    ks = jax.random.split(key, 12)
    # Deterministic synthetic parameters (weights stored as (in, out) for x @ W).
    params = {
        "ln1_w": 1.0 + 0.1 * jax.random.normal(ks[8], (C,), jnp.float32),
        "ln1_b": 0.05 * jax.random.normal(ks[9], (C,), jnp.float32),
        "qkv_w": 0.05 * jax.random.normal(ks[0], (C, 3 * C), jnp.float32),
        "proj_w": 0.05 * jax.random.normal(ks[1], (C, C), jnp.float32),
        "proj_b": 0.05 * jax.random.normal(ks[2], (C,), jnp.float32),
        "ln2_w": 1.0 + 0.1 * jax.random.normal(ks[10], (C,), jnp.float32),
        "ln2_b": 0.05 * jax.random.normal(ks[11], (C,), jnp.float32),
        "fc1_w": 0.05 * jax.random.normal(ks[3], (C, mlp_hidden), jnp.float32),
        "fc1_b": 0.05 * jax.random.normal(ks[4], (mlp_hidden,), jnp.float32),
        "fc2_w": 0.05 * jax.random.normal(ks[5], (mlp_hidden, C), jnp.float32),
        "fc2_b": 0.05 * jax.random.normal(ks[6], (C,), jnp.float32),
    }
    x = jax.random.normal(ks[7], (B, N, C), jnp.float32)

    out = jax.block_until_ready(block_forward(x, params, num_heads))
    ref = block_reference(x, params, num_heads)

    assert out.shape == (B, N, C)
    # Tolerance covers bf16 matmul operands + approx-reciprocal softmax vs f32 reference.
    assert jnp.allclose(out, ref, atol=2e-2, rtol=2e-2), "mismatch vs reference"
    print("KERNEL_OK")
</pallas_src>

<mosaic_0001>
module attributes {stable_mosaic.version = 11 : i64} {
  func.func @block_kernel(%arg0: i32, %arg1: memref<16x32xf32, #tpu.memory_space<vmem>>, %arg2: memref<1x32xf32, #tpu.memory_space<vmem>>, %arg3: memref<1x32xf32, #tpu.memory_space<vmem>>, %arg4: memref<32x96xbf16, #tpu.memory_space<vmem>>, %arg5: memref<32x32xbf16, #tpu.memory_space<vmem>>, %arg6: memref<1x32xf32, #tpu.memory_space<vmem>>, %arg7: memref<1x32xf32, #tpu.memory_space<vmem>>, %arg8: memref<1x32xf32, #tpu.memory_space<vmem>>, %arg9: memref<32x128xbf16, #tpu.memory_space<vmem>>, %arg10: memref<1x128xf32, #tpu.memory_space<vmem>>, %arg11: memref<128x32xbf16, #tpu.memory_space<vmem>>, %arg12: memref<1x32xf32, #tpu.memory_space<vmem>>, %arg13: memref<16x32xf32, #tpu.memory_space<vmem>>) attributes {dimension_semantics = [#tpu.dimension_semantics<parallel>], iteration_bounds = array<i64: 1>, scalar_prefetch = 0 : i64, scratch_operands = 0 : i64, tpu.core_type = #tpu.core_type<tc>, window_params = [{transform_indices = @transform_0, window_bounds = array<i64: 16, 32>}, {pipeline_mode = #tpu.pipeline_mode<synchronous>, transform_indices = @transform_1, window_bounds = array<i64: 1, 32>}, {pipeline_mode = #tpu.pipeline_mode<synchronous>, transform_indices = @transform_2, window_bounds = array<i64: 1, 32>}, {pipeline_mode = #tpu.pipeline_mode<synchronous>, transform_indices = @transform_3, window_bounds = array<i64: 32, 96>}, {pipeline_mode = #tpu.pipeline_mode<synchronous>, transform_indices = @transform_4, window_bounds = array<i64: 32, 32>}, {pipeline_mode = #tpu.pipeline_mode<synchronous>, transform_indices = @transform_5, window_bounds = array<i64: 1, 32>}, {pipeline_mode = #tpu.pipeline_mode<synchronous>, transform_indices = @transform_6, window_bounds = array<i64: 1, 32>}, {pipeline_mode = #tpu.pipeline_mode<synchronous>, transform_indices = @transform_7, window_bounds = array<i64: 1, 32>}, {pipeline_mode = #tpu.pipeline_mode<synchronous>, transform_indices = @transform_8, window_bounds = array<i64: 32, 128>}, {pipeline_mode = #tpu.pipeline_mode<synchronous>, transform_indices = @transform_9, window_bounds = array<i64: 1, 128>}, {pipeline_mode = #tpu.pipeline_mode<synchronous>, transform_indices = @transform_10, window_bounds = array<i64: 128, 32>}, {pipeline_mode = #tpu.pipeline_mode<synchronous>, transform_indices = @transform_11, window_bounds = array<i64: 1, 32>}, {transform_indices = @transform_12, window_bounds = array<i64: 16, 32>}]} {
    %c0 = arith.constant 0 : index
    %c0_0 = arith.constant 0 : index
    %0 = vector.load %arg1[%c0, %c0_0] : memref<16x32xf32, #tpu.memory_space<vmem>>, vector<16x32xf32>
    %c0_1 = arith.constant 0 : index
    %c0_2 = arith.constant 0 : index
    %1 = vector.load %arg2[%c0_1, %c0_2] : memref<1x32xf32, #tpu.memory_space<vmem>>, vector<1x32xf32>
    %c0_3 = arith.constant 0 : index
    %c0_4 = arith.constant 0 : index
    %2 = vector.load %arg3[%c0_3, %c0_4] : memref<1x32xf32, #tpu.memory_space<vmem>>, vector<1x32xf32>
    %cst = arith.constant dense<0.000000e+00> : vector<16xf32>
    %3 = vector.multi_reduction <add>, %0, %cst [1] : vector<16x32xf32> to vector<16xf32>
    %4 = vector.shape_cast %3 : vector<16xf32> to vector<16x1xf32>
    %cst_5 = arith.constant 3.200000e+01 : f32
    %5 = vector.broadcast %cst_5 : f32 to vector<16x1xf32>
    %6 = arith.divf %4, %5 : vector<16x1xf32>
    %7 = vector.broadcast %6 : vector<16x1xf32> to vector<16x32xf32>
    %8 = arith.subf %0, %7 : vector<16x32xf32>
    %9 = arith.mulf %8, %8 : vector<16x32xf32>
    %cst_6 = arith.constant dense<0.000000e+00> : vector<16xf32>
    %10 = vector.multi_reduction <add>, %9, %cst_6 [1] : vector<16x32xf32> to vector<16xf32>
    %11 = vector.shape_cast %10 : vector<16xf32> to vector<16x1xf32>
    %cst_7 = arith.constant 3.200000e+01 : f32
    %12 = vector.broadcast %cst_7 : f32 to vector<16x1xf32>
    %13 = arith.divf %11, %12 : vector<16x1xf32>
    %cst_8 = arith.constant 9.99999974E-6 : f32
    %14 = vector.broadcast %cst_8 : f32 to vector<16x1xf32>
    %15 = arith.addf %13, %14 : vector<16x1xf32>
    %16 = math.rsqrt %15 : vector<16x1xf32>
    %17 = vector.broadcast %16 : vector<16x1xf32> to vector<16x32xf32>
    %18 = arith.mulf %8, %17 : vector<16x32xf32>
    %19 = vector.broadcast %1 : vector<1x32xf32> to vector<16x32xf32>
    %20 = arith.mulf %18, %19 : vector<16x32xf32>
    %21 = vector.broadcast %2 : vector<1x32xf32> to vector<16x32xf32>
    %22 = arith.addf %20, %21 : vector<16x32xf32>
    %23 = arith.truncf %22 : vector<16x32xf32> to vector<16x32xbf16>
    %c0_9 = arith.constant 0 : index
    %c0_10 = arith.constant 0 : index
    %24 = vector.load %arg4[%c0_9, %c0_10] : memref<32x96xbf16, #tpu.memory_space<vmem>>, vector<32x96xbf16>
    %cst_11 = arith.constant dense<0.000000e+00> : vector<16x96xf32>
    %25 = tpu.matmul %23, %24, %cst_11 {dimension_numbers = #tpu.dot_dimension_numbers<[1], [0], [0], [1], [0, 0, 1, 1], [], []>} : vector<16x32xbf16>, vector<32x96xbf16>, vector<16x96xf32> -> vector<16x96xf32>
    %26 = vector.extract_strided_slice %25 {offsets = [0, 0], sizes = [16, 32], strides = [1, 1]} : vector<16x96xf32> to vector<16x32xf32>
    %27 = arith.truncf %26 : vector<16x32xf32> to vector<16x32xbf16>
    %28 = vector.extract_strided_slice %27 {offsets = [0, 0], sizes = [16, 8], strides = [1, 1]} : vector<16x32xbf16> to vector<16x8xbf16>
    %29 = vector.extract_strided_slice %27 {offsets = [0, 8], sizes = [16, 8], strides = [1, 1]} : vector<16x32xbf16> to vector<16x8xbf16>
    %30 = vector.extract_strided_slice %27 {offsets = [0, 16], sizes = [16, 8], strides = [1, 1]} : vector<16x32xbf16> to vector<16x8xbf16>
    %31 = vector.extract_strided_slice %27 {offsets = [0, 24], sizes = [16, 8], strides = [1, 1]} : vector<16x32xbf16> to vector<16x8xbf16>
    %32 = vector.shape_cast %28 : vector<16x8xbf16> to vector<1x16x8xbf16>
    %33 = vector.shape_cast %29 : vector<16x8xbf16> to vector<1x16x8xbf16>
    %34 = vector.shape_cast %30 : vector<16x8xbf16> to vector<1x16x8xbf16>
    %35 = vector.shape_cast %31 : vector<16x8xbf16> to vector<1x16x8xbf16>
    %36 = tpu.concatenate %32, %33, %34, %35 in 0 : vector<1x16x8xbf16>, vector<1x16x8xbf16>, vector<1x16x8xbf16>, vector<1x16x8xbf16> -> vector<4x16x8xbf16>
    %37 = vector.shape_cast %36 : vector<4x16x8xbf16> to vector<8x8x8xbf16>
    %38 = vector.extract_strided_slice %25 {offsets = [0, 32], sizes = [16, 32], strides = [1, 1]} : vector<16x96xf32> to vector<16x32xf32>
    %39 = arith.truncf %38 : vector<16x32xf32> to vector<16x32xbf16>
    %40 = vector.extract_strided_slice %39 {offsets = [0, 0], sizes = [16, 8], strides = [1, 1]} : vector<16x32xbf16> to vector<16x8xbf16>
    %41 = vector.extract_strided_slice %39 {offsets = [0, 8], sizes = [16, 8], strides = [1, 1]} : vector<16x32xbf16> to vector<16x8xbf16>
    %42 = vector.extract_strided_slice %39 {offsets = [0, 16], sizes = [16, 8], strides = [1, 1]} : vector<16x32xbf16> to vector<16x8xbf16>
    %43 = vector.extract_strided_slice %39 {offsets = [0, 24], sizes = [16, 8], strides = [1, 1]} : vector<16x32xbf16> to vector<16x8xbf16>
    %44 = vector.shape_cast %40 : vector<16x8xbf16> to vector<1x16x8xbf16>
    %45 = vector.shape_cast %41 : vector<16x8xbf16> to vector<1x16x8xbf16>
    %46 = vector.shape_cast %42 : vector<16x8xbf16> to vector<1x16x8xbf16>
    %47 = vector.shape_cast %43 : vector<16x8xbf16> to vector<1x16x8xbf16>
    %48 = tpu.concatenate %44, %45, %46, %47 in 0 : vector<1x16x8xbf16>, vector<1x16x8xbf16>, vector<1x16x8xbf16>, vector<1x16x8xbf16> -> vector<4x16x8xbf16>
    %49 = vector.shape_cast %48 : vector<4x16x8xbf16> to vector<8x8x8xbf16>
    %50 = vector.extract_strided_slice %25 {offsets = [0, 64], sizes = [16, 32], strides = [1, 1]} : vector<16x96xf32> to vector<16x32xf32>
    %51 = arith.truncf %50 : vector<16x32xf32> to vector<16x32xbf16>
    %52 = vector.extract_strided_slice %51 {offsets = [0, 0], sizes = [16, 8], strides = [1, 1]} : vector<16x32xbf16> to vector<16x8xbf16>
    %53 = vector.extract_strided_slice %51 {offsets = [0, 8], sizes = [16, 8], strides = [1, 1]} : vector<16x32xbf16> to vector<16x8xbf16>
    %54 = vector.extract_strided_slice %51 {offsets = [0, 16], sizes = [16, 8], strides = [1, 1]} : vector<16x32xbf16> to vector<16x8xbf16>
    %55 = vector.extract_strided_slice %51 {offsets = [0, 24], sizes = [16, 8], strides = [1, 1]} : vector<16x32xbf16> to vector<16x8xbf16>
    %56 = vector.shape_cast %52 : vector<16x8xbf16> to vector<1x16x8xbf16>
    %57 = vector.shape_cast %53 : vector<16x8xbf16> to vector<1x16x8xbf16>
    %58 = vector.shape_cast %54 : vector<16x8xbf16> to vector<1x16x8xbf16>
    %59 = vector.shape_cast %55 : vector<16x8xbf16> to vector<1x16x8xbf16>
    %60 = tpu.concatenate %56, %57, %58, %59 in 0 : vector<1x16x8xbf16>, vector<1x16x8xbf16>, vector<1x16x8xbf16>, vector<1x16x8xbf16> -> vector<4x16x8xbf16>
    %61 = vector.shape_cast %60 : vector<4x16x8xbf16> to vector<8x8x8xbf16>
    "tpu.trace_start"() <{level = 10 : i32, message = "zqd,zkd->zqk"}> : () -> ()
    %cst_12 = arith.constant dense<0.000000e+00> : vector<8x8x8xf32>
    %62 = tpu.matmul %37, %49, %cst_12 {dimension_numbers = #tpu.dot_dimension_numbers<[2], [2], [1], [1], [0, 0, 0, 1, 1, 1], [0], [0]>} : vector<8x8x8xbf16>, vector<8x8x8xbf16>, vector<8x8x8xf32> -> vector<8x8x8xf32>
    "tpu.trace_stop"() : () -> ()
    %cst_13 = arith.constant dense<0xFF800000> : vector<8x8xf32>
    %63 = vector.multi_reduction <maximumf>, %62, %cst_13 [2] : vector<8x8x8xf32> to vector<8x8xf32>
    %64 = vector.shape_cast %63 : vector<8x8xf32> to vector<8x8x1xf32>
    %65 = vector.broadcast %64 : vector<8x8x1xf32> to vector<8x8x8xf32>
    %66 = arith.subf %62, %65 : vector<8x8x8xf32>
    %67 = math.exp %66 : vector<8x8x8xf32>
    %cst_14 = arith.constant dense<0.000000e+00> : vector<8x8xf32>
    %68 = vector.multi_reduction <add>, %67, %cst_14 [2] : vector<8x8x8xf32> to vector<8x8xf32>
    %69 = vector.shape_cast %68 : vector<8x8xf32> to vector<8x8x1xf32>
    %70 = tpu.reciprocal %69 {approx = true} : vector<8x8x1xf32> -> vector<8x8x1xf32>
    %71 = vector.broadcast %70 : vector<8x8x1xf32> to vector<8x8x8xf32>
    %72 = arith.mulf %67, %71 : vector<8x8x8xf32>
    %73 = arith.truncf %72 : vector<8x8x8xf32> to vector<8x8x8xbf16>
    "tpu.trace_start"() <{level = 10 : i32, message = "zqk,zkd->zqd"}> : () -> ()
    %cst_15 = arith.constant dense<0.000000e+00> : vector<8x8x8xf32>
    %74 = tpu.matmul %73, %61, %cst_15 {dimension_numbers = #tpu.dot_dimension_numbers<[2], [1], [1], [2], [0, 0, 0, 1, 1, 2], [0], [0]>} : vector<8x8x8xbf16>, vector<8x8x8xbf16>, vector<8x8x8xf32> -> vector<8x8x8xf32>
    "tpu.trace_stop"() : () -> ()
    %75 = vector.shape_cast %74 : vector<8x8x8xf32> to vector<4x16x8xf32>
    %76 = arith.truncf %75 : vector<4x16x8xf32> to vector<4x16x8xbf16>
    %77 = vector.extract_strided_slice %76 {offsets = [0, 0, 0], sizes = [1, 16, 8], strides = [1, 1, 1]} : vector<4x16x8xbf16> to vector<1x16x8xbf16>
    %78 = vector.shape_cast %77 : vector<1x16x8xbf16> to vector<16x8xbf16>
    %79 = vector.extract_strided_slice %76 {offsets = [1, 0, 0], sizes = [1, 16, 8], strides = [1, 1, 1]} : vector<4x16x8xbf16> to vector<1x16x8xbf16>
    %80 = vector.shape_cast %79 : vector<1x16x8xbf16> to vector<16x8xbf16>
    %81 = vector.extract_strided_slice %76 {offsets = [2, 0, 0], sizes = [1, 16, 8], strides = [1, 1, 1]} : vector<4x16x8xbf16> to vector<1x16x8xbf16>
    %82 = vector.shape_cast %81 : vector<1x16x8xbf16> to vector<16x8xbf16>
    %83 = vector.extract_strided_slice %76 {offsets = [3, 0, 0], sizes = [1, 16, 8], strides = [1, 1, 1]} : vector<4x16x8xbf16> to vector<1x16x8xbf16>
    %84 = vector.shape_cast %83 : vector<1x16x8xbf16> to vector<16x8xbf16>
    %85 = tpu.concatenate %78, %80, %82, %84 in 1 : vector<16x8xbf16>, vector<16x8xbf16>, vector<16x8xbf16>, vector<16x8xbf16> -> vector<16x32xbf16>
    %c0_16 = arith.constant 0 : index
    %c0_17 = arith.constant 0 : index
    %86 = vector.load %arg5[%c0_16, %c0_17] : memref<32x32xbf16, #tpu.memory_space<vmem>>, vector<32x32xbf16>
    %cst_18 = arith.constant dense<0.000000e+00> : vector<16x32xf32>
    %87 = tpu.matmul %85, %86, %cst_18 {dimension_numbers = #tpu.dot_dimension_numbers<[1], [0], [0], [1], [0, 0, 1, 1], [], []>} : vector<16x32xbf16>, vector<32x32xbf16>, vector<16x32xf32> -> vector<16x32xf32>
    %c0_19 = arith.constant 0 : index
    %c0_20 = arith.constant 0 : index
    %88 = vector.load %arg6[%c0_19, %c0_20] : memref<1x32xf32, #tpu.memory_space<vmem>>, vector<1x32xf32>
    %89 = vector.broadcast %88 : vector<1x32xf32> to vector<16x32xf32>
    %90 = arith.addf %87, %89 : vector<16x32xf32>
    %91 = arith.addf %0, %90 : vector<16x32xf32>
    %c0_21 = arith.constant 0 : index
    %c0_22 = arith.constant 0 : index
    %92 = vector.load %arg7[%c0_21, %c0_22] : memref<1x32xf32, #tpu.memory_space<vmem>>, vector<1x32xf32>
    %c0_23 = arith.constant 0 : index
    %c0_24 = arith.constant 0 : index
    %93 = vector.load %arg8[%c0_23, %c0_24] : memref<1x32xf32, #tpu.memory_space<vmem>>, vector<1x32xf32>
    %cst_25 = arith.constant dense<0.000000e+00> : vector<16xf32>
    %94 = vector.multi_reduction <add>, %91, %cst_25 [1] : vector<16x32xf32> to vector<16xf32>
    %95 = vector.shape_cast %94 : vector<16xf32> to vector<16x1xf32>
    %cst_26 = arith.constant 3.200000e+01 : f32
    %96 = vector.broadcast %cst_26 : f32 to vector<16x1xf32>
    %97 = arith.divf %95, %96 : vector<16x1xf32>
    %98 = vector.broadcast %97 : vector<16x1xf32> to vector<16x32xf32>
    %99 = arith.subf %91, %98 : vector<16x32xf32>
    %100 = arith.mulf %99, %99 : vector<16x32xf32>
    %cst_27 = arith.constant dense<0.000000e+00> : vector<16xf32>
    %101 = vector.multi_reduction <add>, %100, %cst_27 [1] : vector<16x32xf32> to vector<16xf32>
    %102 = vector.shape_cast %101 : vector<16xf32> to vector<16x1xf32>
    %cst_28 = arith.constant 3.200000e+01 : f32
    %103 = vector.broadcast %cst_28 : f32 to vector<16x1xf32>
    %104 = arith.divf %102, %103 : vector<16x1xf32>
    %cst_29 = arith.constant 9.99999974E-6 : f32
    %105 = vector.broadcast %cst_29 : f32 to vector<16x1xf32>
    %106 = arith.addf %104, %105 : vector<16x1xf32>
    %107 = math.rsqrt %106 : vector<16x1xf32>
    %108 = vector.broadcast %107 : vector<16x1xf32> to vector<16x32xf32>
    %109 = arith.mulf %99, %108 : vector<16x32xf32>
    %110 = vector.broadcast %92 : vector<1x32xf32> to vector<16x32xf32>
    %111 = arith.mulf %109, %110 : vector<16x32xf32>
    %112 = vector.broadcast %93 : vector<1x32xf32> to vector<16x32xf32>
    %113 = arith.addf %111, %112 : vector<16x32xf32>
    %114 = arith.truncf %113 : vector<16x32xf32> to vector<16x32xbf16>
    %c0_30 = arith.constant 0 : index
    %c0_31 = arith.constant 0 : index
    %115 = vector.load %arg9[%c0_30, %c0_31] : memref<32x128xbf16, #tpu.memory_space<vmem>>, vector<32x128xbf16>
    %cst_32 = arith.constant dense<0.000000e+00> : vector<16x128xf32>
    %116 = tpu.matmul %114, %115, %cst_32 {dimension_numbers = #tpu.dot_dimension_numbers<[1], [0], [0], [1], [0, 0, 1, 1], [], []>} : vector<16x32xbf16>, vector<32x128xbf16>, vector<16x128xf32> -> vector<16x128xf32>
    %c0_33 = arith.constant 0 : index
    %c0_34 = arith.constant 0 : index
    %117 = vector.load %arg10[%c0_33, %c0_34] : memref<1x128xf32, #tpu.memory_space<vmem>>, vector<1x128xf32>
    %118 = vector.broadcast %117 : vector<1x128xf32> to vector<16x128xf32>
    %119 = arith.addf %116, %118 : vector<16x128xf32>
    %cst_35 = arith.constant 5.000000e-01 : f32
    %120 = vector.broadcast %cst_35 : f32 to vector<16x128xf32>
    %121 = arith.mulf %120, %119 : vector<16x128xf32>
    %cst_36 = arith.constant 0.707106769 : f32
    %122 = vector.broadcast %cst_36 : f32 to vector<16x128xf32>
    %123 = arith.mulf %119, %122 : vector<16x128xf32>
    %124 = math.erf %123 : vector<16x128xf32>
    %cst_37 = arith.constant 1.000000e+00 : f32
    %125 = vector.broadcast %cst_37 : f32 to vector<16x128xf32>
    %126 = arith.addf %125, %124 : vector<16x128xf32>
    %127 = arith.mulf %121, %126 : vector<16x128xf32>
    %128 = arith.truncf %127 : vector<16x128xf32> to vector<16x128xbf16>
    %c0_38 = arith.constant 0 : index
    %c0_39 = arith.constant 0 : index
    %129 = vector.load %arg11[%c0_38, %c0_39] : memref<128x32xbf16, #tpu.memory_space<vmem>>, vector<128x32xbf16>
    %cst_40 = arith.constant dense<0.000000e+00> : vector<16x32xf32>
    %130 = tpu.matmul %128, %129, %cst_40 {dimension_numbers = #tpu.dot_dimension_numbers<[1], [0], [0], [1], [0, 0, 1, 1], [], []>} : vector<16x128xbf16>, vector<128x32xbf16>, vector<16x32xf32> -> vector<16x32xf32>
    %c0_41 = arith.constant 0 : index
    %c0_42 = arith.constant 0 : index
    %131 = vector.load %arg12[%c0_41, %c0_42] : memref<1x32xf32, #tpu.memory_space<vmem>>, vector<1x32xf32>
    %132 = vector.broadcast %131 : vector<1x32xf32> to vector<16x32xf32>
    %133 = arith.addf %130, %132 : vector<16x32xf32>
    %134 = arith.addf %91, %133 : vector<16x32xf32>
    %c0_43 = arith.constant 0 : index
    %c0_44 = arith.constant 0 : index
    %135 = vector.load %arg13[%c0_43, %c0_44] : memref<16x32xf32, #tpu.memory_space<vmem>>, vector<16x32xf32>
    tpu.vector_store %arg13[%c0_43, %c0_44], %134 {strides = array<i32>} : memref<16x32xf32, #tpu.memory_space<vmem>>, vector<16x32xf32>,
    return
  }
  func.func @transform_0(%arg0: i32) -> (i32, i32) {
    %c0_i32 = arith.constant 0 : i32
    %c0_i32_0 = arith.constant 0 : i32
    return %arg0, %c0_i32 : i32, i32
  }
  func.func @transform_1(%arg0: i32) -> (i32, i32) {
    %c0_i32 = arith.constant 0 : i32
    %c0_i32_0 = arith.constant 0 : i32
    %c0_i32_1 = arith.constant 0 : i32
    return %c0_i32, %c0_i32_0 : i32, i32
  }
  func.func @transform_2(%arg0: i32) -> (i32, i32) {
    %c0_i32 = arith.constant 0 : i32
    %c0_i32_0 = arith.constant 0 : i32
    %c0_i32_1 = arith.constant 0 : i32
    return %c0_i32, %c0_i32_0 : i32, i32
  }
  func.func @transform_3(%arg0: i32) -> (i32, i32) {
    %c0_i32 = arith.constant 0 : i32
    %c0_i32_0 = arith.constant 0 : i32
    %c0_i32_1 = arith.constant 0 : i32
    return %c0_i32, %c0_i32_0 : i32, i32
  }
  func.func @transform_4(%arg0: i32) -> (i32, i32) {
    %c0_i32 = arith.constant 0 : i32
    %c0_i32_0 = arith.constant 0 : i32
    %c0_i32_1 = arith.constant 0 : i32
    return %c0_i32, %c0_i32_0 : i32, i32
  }
  func.func @transform_5(%arg0: i32) -> (i32, i32) {
    %c0_i32 = arith.constant 0 : i32
    %c0_i32_0 = arith.constant 0 : i32
    %c0_i32_1 = arith.constant 0 : i32
    return %c0_i32, %c0_i32_0 : i32, i32
  }
  func.func @transform_6(%arg0: i32) -> (i32, i32) {
    %c0_i32 = arith.constant 0 : i32
    %c0_i32_0 = arith.constant 0 : i32
    %c0_i32_1 = arith.constant 0 : i32
    return %c0_i32, %c0_i32_0 : i32, i32
  }
  func.func @transform_7(%arg0: i32) -> (i32, i32) {
    %c0_i32 = arith.constant 0 : i32
    %c0_i32_0 = arith.constant 0 : i32
    %c0_i32_1 = arith.constant 0 : i32
    return %c0_i32, %c0_i32_0 : i32, i32
  }
  func.func @transform_8(%arg0: i32) -> (i32, i32) {
    %c0_i32 = arith.constant 0 : i32
    %c0_i32_0 = arith.constant 0 : i32
    %c0_i32_1 = arith.constant 0 : i32
    return %c0_i32, %c0_i32_0 : i32, i32
  }
  func.func @transform_9(%arg0: i32) -> (i32, i32) {
    %c0_i32 = arith.constant 0 : i32
    %c0_i32_0 = arith.constant 0 : i32
    %c0_i32_1 = arith.constant 0 : i32
    return %c0_i32, %c0_i32_0 : i32, i32
  }
  func.func @transform_10(%arg0: i32) -> (i32, i32) {
    %c0_i32 = arith.constant 0 : i32
    %c0_i32_0 = arith.constant 0 : i32
    %c0_i32_1 = arith.constant 0 : i32
    return %c0_i32, %c0_i32_0 : i32, i32
  }
  func.func @transform_11(%arg0: i32) -> (i32, i32) {
    %c0_i32 = arith.constant 0 : i32
    %c0_i32_0 = arith.constant 0 : i32
    %c0_i32_1 = arith.constant 0 : i32
    return %c0_i32, %c0_i32_0 : i32, i32
  }
  func.func @transform_12(%arg0: i32) -> (i32, i32) {
    %c0_i32 = arith.constant 0 : i32
    %c0_i32_0 = arith.constant 0 : i32
    return %arg0, %c0_i32 : i32, i32
  }
}

</mosaic_0001>

<bundles_post_ra>
// kernel: tpu_custom_call.1
= control target key start
LH: loop header
LB: loop body
LE: loop exit
PB: predicated region body
PF: predicated region fallthrough
CT: control target
= control target key end

     0   :  { %17 = vsyncpa [#allocation3], 0  ;;  %s2692_s0 = inlined_call_operand.hbm [shape: f32[16,32], index: 0, kind: input, shape index: {}]   ;;  %s2693_s1 = inlined_call_operand.hbm [shape: f32[1,32], index: 1, kind: input, shape index: {}]   ;;  %s2694_s2 = inlined_call_operand.hbm [shape: f32[1,32], index: 2, kind: input, shape index: {}]   ;;  %s2695_s3 = inlined_call_operand.hbm [shape: bf16[32,96], index: 3, kind: input, shape index: {}]   ;;  %s2696_s4 = inlined_call_operand.hbm [shape: bf16[32,32], index: 4, kind: input, shape index: {}]   ;;  %s2697_s5 = inlined_call_operand.hbm [shape: f32[1,32], index: 5, kind: input, shape index: {}]   ;;  %s2698_s6 = inlined_call_operand.hbm [shape: f32[1,32], index: 6, kind: input, shape index: {}]   ;;  %s2699_s7 = inlined_call_operand.hbm [shape: f32[1,32], index: 7, kind: input, shape index: {}]   ;;  %s2700_s8 = inlined_call_operand.hbm [shape: bf16[32,128], index: 8, kind: input, shape index: {}]   ;;  %s2701_s9 = inlined_call_operand.hbm [shape: f32[1,128], index: 9, kind: input, shape index: {}]   ;;  %s2702_s10 = inlined_call_operand.hbm [shape: bf16[128,32], index: 10, kind: input, shape index: {}]   ;;  %s2703_s11 = inlined_call_operand.hbm [shape: f32[1,32], index: 11, kind: input, shape index: {}]   ;;  %s2704_s12 = inlined_call_operand.hbm [shape: f32[16,32], index: 12, kind: output, shape index: {}]  }
   0x1   :  { %18 = vsyncpa [#allocation6], 0 }
   0x2   :  { %19 = vsyncpa [#allocation9], 0 }
   0x3   :  { %20 = vsyncpa [#allocation12], 0 }
   0x4   :  { %21 = vsyncpa [#allocation15], 0 }
   0x5   :  { %22 = vsyncpa [#allocation18], 0 }
   0x6   :  { %23 = vsyncpa [#allocation21], 0 }
   0x7   :  { %24 = vsyncpa [#allocation4], 0  ;;  %s2168_s21 = smov [#allocation5]   ;;  %s2169_s23 = smov [#allocation8]  }
   0x8   :  { %s43_s22 = sshll.u32 %s2168_s21, 4  ;;  %s62_s24 = sshll.u32 %s2169_s23, 4  ;;  %s44_s22 = int_to_ptr.vmem [resolvable:$true] %s43_s22  ;;  %s2258_s24 = int_to_ptr.vmem [resolvable:$true] %s62_s24 }
   0x9   :  { %s1866_s27 = scalar_lea.hbm %s2693_s1, 16 }
   0xa   :  { %p1867_p0 = scmp.ne.s32.totalorder %s2693_s1, %s1866_s27  ;;  %p1870_p1 = scmp.lt.u32.totalorder %s1866_s27, %s2693_s1 }
   0xc   :  { %p1872_p2 = pnand %p1870_p1, %p1867_p0 }
   0xe   :  { %1875 = shalt.err (!%p1872_p2)
}
   0xf   :  { %s1876_s14 = scalar_lea.vmem %s44_s22, 16  ;;  %s1880_s15 = scalar_lea.vmem %s44_s22, 32 }
  0x10   :  { %p1877_p3 = scmp.ne.s32.totalorder %s44_s22, %s1876_s14  ;;  %p1881_p4 = scmp.lt.s32.totalorder %s44_s22, %s44_s22 }
  0x11   :  { %p1882_p5 = scmp.lt.s32.totalorder %s1880_s15, %s1876_s14 }
  0x13   :  { %p1883_p6 = por %p1882_p5, %p1881_p4 }
  0x15   :  { %p1884_p7 = pnand %p1883_p6, %p1877_p3 }
  0x17   :  { %1887 = shalt.err (!%p1884_p7)
}
  0x18   :  { %46 = dma.hbm_to_vmem [thread:$0]  %s2693_s1, 16, %s44_s22, [#allocation6]  }
  0x19   :  { %s1888_s20 = scalar_lea.hbm %s2695_s3, 256 }
  0x1a   :  { %p1889_p8 = scmp.ne.s32.totalorder %s2695_s3, %s1888_s20  ;;  %p1892_p9 = scmp.lt.u32.totalorder %s1888_s20, %s2695_s3 }
  0x1c   :  { %p1894_p10 = pnand %p1892_p9, %p1889_p8 }
  0x1e   :  { %1897 = shalt.err (!%p1894_p10)
}
  0x1f   :  { %s1898_s27 = scalar_lea.vmem %s2258_s24, 256  ;;  %p1903_p12 = scmp.lt.s32.totalorder %s2258_s24, %s2258_s24 }
  0x20   :  { %p1899_p11 = scmp.ne.s32.totalorder %s2258_s24, %s1898_s27  ;;  %p1904_p13 = scmp.lt.s32.totalorder %s1898_s27, %s1898_s27 }
  0x22   :  { %p1905_p0 = por %p1904_p13, %p1903_p12 }
  0x24   :  { %p1906_p1 = pnand %p1905_p0, %p1899_p11 }
  0x26   :  { %1909 = shalt.err (!%p1906_p1)
}
  0x27   :  { %s2170_s1 = smov 64   ;;  %s2171_s22 = smov 4  }
  0x28   :  { %68 = dma.hbm_to_vmem [thread:$0]  %s2695_s3, 256, %s2258_s24, [#allocation9], %s2170_s1, %s2170_s1, %s2171_s22  }
  0x29   :  { %s2172_s30 = smov [#allocation11]   ;;  %s2173_s14 = smov [#allocation14]  }
  0x2a   :  { %s87_s13 = sshll.u32 %s2172_s30, 4  ;;  %s107_s15 = sshll.u32 %s2173_s14, 4  ;;  %s88_s13 = int_to_ptr.vmem [resolvable:$true] %s87_s13  ;;  %s108_s15 = int_to_ptr.vmem [resolvable:$true] %s107_s15 }
  0x2b   :  { %s1910_s18 = scalar_lea.hbm %s2697_s5, 16 }
  0x2c   :  { %p1911_p2 = scmp.ne.s32.totalorder %s2697_s5, %s1910_s18  ;;  %p1914_p3 = scmp.lt.u32.totalorder %s1910_s18, %s2697_s5 }
  0x2e   :  { %p1916_p4 = pnand %p1914_p3, %p1911_p2 }
  0x30   :  { %1919 = shalt.err (!%p1916_p4)
}
  0x31   :  { %s1920_s3 = scalar_lea.vmem %s88_s13, 16  ;;  %s1924_s24 = scalar_lea.vmem %s88_s13, 32 }
  0x32   :  { %p1921_p5 = scmp.ne.s32.totalorder %s88_s13, %s1920_s3  ;;  %p1925_p6 = scmp.lt.s32.totalorder %s88_s13, %s88_s13 }
  0x33   :  { %p1926_p7 = scmp.lt.s32.totalorder %s1924_s24, %s1920_s3 }
  0x35   :  { %p1927_p8 = por %p1926_p7, %p1925_p6 }
  0x37   :  { %p1928_p9 = pnand %p1927_p8, %p1921_p5 }
  0x39   :  { %1931 = shalt.err (!%p1928_p9)
}
  0x3a   :  { %90 = dma.hbm_to_vmem [thread:$0]  %s2697_s5, 16, %s88_s13, [#allocation12]  }
  0x3b   :  { %s1932_s29 = scalar_lea.hbm %s2699_s7, 16 }
  0x3c   :  { %p1933_p10 = scmp.ne.s32.totalorder %s2699_s7, %s1932_s29  ;;  %p1936_p11 = scmp.lt.u32.totalorder %s1932_s29, %s2699_s7 }
  0x3e   :  { %p1938_p12 = pnand %p1936_p11, %p1933_p10 }
  0x40   :  { %1941 = shalt.err (!%p1938_p12)
}
  0x41   :  { %s1942_s18 = scalar_lea.vmem %s108_s15, 16  ;;  %s1946_s19 = scalar_lea.vmem %s108_s15, 32 }
  0x42   :  { %p1943_p13 = scmp.ne.s32.totalorder %s108_s15, %s1942_s18  ;;  %p1947_p0 = scmp.lt.s32.totalorder %s108_s15, %s108_s15 }
  0x43   :  { %p1948_p1 = scmp.lt.s32.totalorder %s1946_s19, %s1942_s18 }
  0x45   :  { %p1949_p2 = por %p1948_p1, %p1947_p0 }
  0x47   :  { %p1950_p3 = pnand %p1949_p2, %p1943_p13 }
  0x49   :  { %1953 = shalt.err (!%p1950_p3)
}
  0x4a   :  { %110 = dma.hbm_to_vmem [thread:$0]  %s2699_s7, 16, %s108_s15, [#allocation15]  }
  0x4b   :  { %s2174_s20 = smov [#allocation17]   ;;  %s2175_s23 = smov [#allocation2]  }
  0x4c   :  { %s129_s21 = sshll.u32 %s2174_s20, 4  ;;  %s30_s3 = sshll.u32 %s2175_s23, 4  ;;  %s130_s21 = int_to_ptr.vmem [resolvable:$true] %s129_s21  ;;  %s2316_s3 = int_to_ptr.vmem [resolvable:$true] %s30_s3 }
  0x4d   :  { %s1954_s26 = scalar_lea.hbm %s2701_s9, 16 }
  0x4e   :  { %p1955_p4 = scmp.ne.s32.totalorder %s2701_s9, %s1954_s26  ;;  %p1958_p5 = scmp.lt.u32.totalorder %s1954_s26, %s2701_s9 }
  0x50   :  { %p1960_p6 = pnand %p1958_p5, %p1955_p4 }
  0x52   :  { %1963 = shalt.err (!%p1960_p6)
}
  0x53   :  { %s1964_s7 = scalar_lea.vmem %s130_s21, 16  ;;  %s1968_s15 = scalar_lea.vmem %s130_s21, 32 }
  0x54   :  { %p1965_p7 = scmp.ne.s32.totalorder %s130_s21, %s1964_s7  ;;  %p1969_p8 = scmp.lt.s32.totalorder %s130_s21, %s130_s21 }
  0x55   :  { %p1970_p9 = scmp.lt.s32.totalorder %s1968_s15, %s1964_s7 }
  0x57   :  { %p1971_p10 = por %p1970_p9, %p1969_p8 }
  0x59   :  { %p1972_p11 = pnand %p1971_p10, %p1965_p7 }
  0x5b   :  { %1975 = shalt.err (!%p1972_p11)
}
  0x5c   :  { %132 = dma.hbm_to_vmem [thread:$0]  %s2701_s9, 16, %s130_s21, [#allocation18]  }
  0x5d   :  { %s1976_s19 = scalar_lea.hbm %s2692_s0, 256 }
  0x5e   :  { %p1977_p12 = scmp.ne.s32.totalorder %s2692_s0, %s1976_s19  ;;  %p1980_p13 = scmp.lt.u32.totalorder %s1976_s19, %s2692_s0 }
  0x60   :  { %p1982_p0 = pnand %p1980_p13, %p1977_p12 }
  0x62   :  { %1985 = shalt.err (!%p1982_p0)
}
  0x63   :  { %s1986_s24 = scalar_lea.vmem %s2316_s3, 256  ;;  %p1991_p2 = scmp.lt.s32.totalorder %s2316_s3, %s2316_s3 }
  0x64   :  { %p1987_p1 = scmp.ne.s32.totalorder %s2316_s3, %s1986_s24  ;;  %p1992_p3 = scmp.lt.s32.totalorder %s1986_s24, %s1986_s24 }
  0x66   :  { %p1993_p4 = por %p1992_p3, %p1991_p2 }
  0x68   :  { %p1994_p5 = pnand %p1993_p4, %p1987_p1 }
  0x6a   :  { %1997 = shalt.err (!%p1994_p5)
}
  0x6b   :  { %s2176_s9 = smov 128   ;;  %s2177_s21 = smov 8  }
  0x6c   :  { %36 = dma.hbm_to_vmem [thread:$0]  %s2692_s0, 256, %s2316_s3, [#allocation3], %s2176_s9, %s2176_s9, %s2177_s21  }
  0x6d   :  { %s2178_s27 = smov [#allocation7]   ;;  %s2179_s29 = smov [#allocation10]  }
  0x6e   :  { %s53_s28 = sshll.u32 %s2178_s27, 4  ;;  %s74_s30 = sshll.u32 %s2179_s29, 4  ;;  %s54_s28 = int_to_ptr.vmem [resolvable:$true] %s53_s28  ;;  %s2350_s30 = int_to_ptr.vmem [resolvable:$true] %s74_s30 }
  0x6f   :  { %s1998_s14 = scalar_lea.hbm %s2694_s2, 16 }
  0x70   :  { %p1999_p6 = scmp.ne.s32.totalorder %s2694_s2, %s1998_s14  ;;  %p2002_p7 = scmp.lt.u32.totalorder %s1998_s14, %s2694_s2 }
  0x72   :  { %p2004_p8 = pnand %p2002_p7, %p1999_p6 }
  0x74   :  { %2007 = shalt.err (!%p2004_p8)
}
  0x75   :  { %s2008_s0 = scalar_lea.vmem %s54_s28, 16  ;;  %s2012_s3 = scalar_lea.vmem %s54_s28, 32 }
  0x76   :  { %p2009_p9 = scmp.ne.s32.totalorder %s54_s28, %s2008_s0  ;;  %p2013_p10 = scmp.lt.s32.totalorder %s54_s28, %s54_s28 }
  0x77   :  { %p2014_p11 = scmp.lt.s32.totalorder %s2012_s3, %s2008_s0 }
  0x79   :  { %p2015_p12 = por %p2014_p11, %p2013_p10 }
  0x7b   :  { %p2016_p13 = pnand %p2015_p12, %p2009_p9 }
  0x7d   :  { %2019 = shalt.err (!%p2016_p13)
}
  0x7e   :  { %56 = dma.hbm_to_vmem [thread:$0]  %s2694_s2, 16, %s54_s28, [#allocation6]  }
  0x7f   :  { %s2020_s24 = scalar_lea.hbm %s2696_s4, 256 }
  0x80   :  { %p2021_p0 = scmp.ne.s32.totalorder %s2696_s4, %s2020_s24  ;;  %p2024_p1 = scmp.lt.u32.totalorder %s2020_s24, %s2696_s4 }
  0x82   :  { %p2026_p2 = pnand %p2024_p1, %p2021_p0 }
  0x84   :  { %2029 = shalt.err (!%p2026_p2)
}
  0x85   :  { %s2030_s7 = scalar_lea.vmem %s2350_s30, 256  ;;  %p2035_p4 = scmp.lt.s32.totalorder %s2350_s30, %s2350_s30 }
  0x86   :  { %p2031_p3 = scmp.ne.s32.totalorder %s2350_s30, %s2030_s7  ;;  %p2036_p5 = scmp.lt.s32.totalorder %s2030_s7, %s2030_s7 }
  0x88   :  { %p2037_p6 = por %p2036_p5, %p2035_p4 }
  0x8a   :  { %p2038_p7 = pnand %p2037_p6, %p2031_p3 }
  0x8c   :  { %2041 = shalt.err (!%p2038_p7)
}
  0x8d   :  { %80 = dma.hbm_to_vmem [thread:$0]  %s2696_s4, 256, %s2350_s30, [#allocation9], %s2170_s1, %s2170_s1, %s2171_s22  }
  0x8e   :  { %s2180_s15 = smov [#allocation13]   ;;  %s2181_s16 = smov [#allocation16]  }
  0x8f   :  { %s97_s14 = sshll.u32 %s2180_s15, 4  ;;  %s116_s17 = sshll.u32 %s2181_s16, 4  ;;  %s98_s14 = int_to_ptr.vmem [resolvable:$true] %s97_s14  ;;  %s2384_s17 = int_to_ptr.vmem [resolvable:$true] %s116_s17 }
  0x90   :  { %s2042_s0 = scalar_lea.hbm %s2698_s6, 16 }
  0x91   :  { %p2043_p8 = scmp.ne.s32.totalorder %s2698_s6, %s2042_s0  ;;  %p2046_p9 = scmp.lt.u32.totalorder %s2042_s0, %s2698_s6 }
  0x93   :  { %p2048_p10 = pnand %p2046_p9, %p2043_p8 }
  0x95   :  { %2051 = shalt.err (!%p2048_p10)
}
  0x96   :  { %s2052_s4 = scalar_lea.vmem %s98_s14, 16  ;;  %s2056_s30 = scalar_lea.vmem %s98_s14, 32 }
  0x97   :  { %p2053_p11 = scmp.ne.s32.totalorder %s98_s14, %s2052_s4  ;;  %p2057_p12 = scmp.lt.s32.totalorder %s98_s14, %s98_s14 }
  0x98   :  { %p2058_p13 = scmp.lt.s32.totalorder %s2056_s30, %s2052_s4 }
  0x9a   :  { %p2059_p0 = por %p2058_p13, %p2057_p12 }
  0x9c   :  { %p2060_p1 = pnand %p2059_p0, %p2053_p11 }
  0x9e   :  { %2063 = shalt.err (!%p2060_p1)
}
  0x9f   :  { %100 = dma.hbm_to_vmem [thread:$0]  %s2698_s6, 16, %s98_s14, [#allocation12]  }
  0xa0   :  { %s2064_s27 = scalar_lea.hbm %s2700_s8, 256 }
  0xa1   :  { %p2065_p2 = scmp.ne.s32.totalorder %s2700_s8, %s2064_s27  ;;  %p2068_p3 = scmp.lt.u32.totalorder %s2064_s27, %s2700_s8 }
  0xa3   :  { %p2070_p4 = pnand %p2068_p3, %p2065_p2 }
  0xa5   :  { %2073 = shalt.err (!%p2070_p4)
}
  0xa6   :  { %s2074_s15 = scalar_lea.vmem %s2384_s17, 256  ;;  %p2079_p6 = scmp.lt.s32.totalorder %s2384_s17, %s2384_s17 }
  0xa7   :  { %p2075_p5 = scmp.ne.s32.totalorder %s2384_s17, %s2074_s15  ;;  %p2080_p7 = scmp.lt.s32.totalorder %s2074_s15, %s2074_s15 }
  0xa9   :  { %p2081_p8 = por %p2080_p7, %p2079_p6 }
  0xab   :  { %p2082_p9 = pnand %p2081_p8, %p2075_p5 }
  0xad   :  { %2085 = shalt.err (!%p2082_p9)
}
  0xae   :  { %122 = dma.hbm_to_vmem [thread:$0]  %s2700_s8, 256, %s2384_s17, [#allocation15], %s2170_s1, %s2170_s1, %s2171_s22  }
  0xaf   :  { %s2182_s16 = smov [#allocation19]   ;;  %s2183_s19 = smov [#allocation20]  }
  0xb0   :  { %s138_s18 = sshll.u32 %s2182_s16, 4  ;;  %s151_s0 = sshll.u32 %s2183_s19, 4  ;;  %s139_s18 = int_to_ptr.vmem [resolvable:$true] %s138_s18  ;;  %s152_s0 = int_to_ptr.vmem [resolvable:$true] %s151_s0 }
  0xb1   :  { %s2086_s13 = scalar_lea.hbm %s2702_s10, 1024 }
  0xb2   :  { %p2087_p10 = scmp.ne.s32.totalorder %s2702_s10, %s2086_s13  ;;  %p2090_p11 = scmp.lt.u32.totalorder %s2086_s13, %s2702_s10 }
  0xb4   :  { %p2092_p12 = pnand %p2090_p11, %p2087_p10 }
  0xb6   :  { %2095 = shalt.err (!%p2092_p12)
}
  0xb7   :  { %s2096_s8 = scalar_lea.vmem %s139_s18, 1024  ;;  %p2101_p0 = scmp.lt.s32.totalorder %s139_s18, %s139_s18 }
  0xb8   :  { %p2097_p13 = scmp.ne.s32.totalorder %s139_s18, %s2096_s8  ;;  %p2102_p1 = scmp.lt.s32.totalorder %s2096_s8, %s2096_s8 }
  0xba   :  { %p2103_p2 = por %p2102_p1, %p2101_p0 }
  0xbc   :  { %p2104_p3 = pnand %p2103_p2, %p2097_p13 }
  0xbe   :  { %2107 = shalt.err (!%p2104_p3)
}
  0xbf   :  { %144 = dma.hbm_to_vmem [thread:$0]  %s2702_s10, 1024, %s139_s18, [#allocation18], %s2170_s1, %s2170_s1, %s2171_s22  }
  0xc0   :  { %s2108_s27 = scalar_lea.hbm %s2703_s11, 16 }
  0xc1   :  { %p2109_p4 = scmp.ne.s32.totalorder %s2703_s11, %s2108_s27  ;;  %p2112_p5 = scmp.lt.u32.totalorder %s2108_s27, %s2703_s11 }
  0xc3   :  { %p2114_p6 = pnand %p2112_p5, %p2109_p4 }
  0xc5   :  { %2117 = shalt.err (!%p2114_p6)
}
  0xc6   :  { %s2118_s15 = scalar_lea.vmem %s152_s0, 16  ;;  %s2122_s6 = scalar_lea.vmem %s152_s0, 32 }
  0xc7   :  { %p2119_p7 = scmp.ne.s32.totalorder %s152_s0, %s2118_s15  ;;  %p2123_p8 = scmp.lt.s32.totalorder %s152_s0, %s152_s0 }
  0xc8   :  { %p2124_p9 = scmp.lt.s32.totalorder %s2122_s6, %s2118_s15 }
  0xca   :  { %p2125_p10 = por %p2124_p9, %p2123_p8 }
  0xcc   :  { %p2126_p11 = pnand %p2125_p10, %p2119_p7 }
  0xce   :  { %2129 = shalt.err (!%p2126_p11)
}
  0xcf   :  { %154 = dma.hbm_to_vmem [thread:$0]  %s2703_s11, 16, %s152_s0, [#allocation21]  }
  0xd0   :  { %2152 = dma.done.wait [#allocation3], 256  }
  0xd1   :  { %2153 = vsyncadd [#allocation3], 4294967040 }
  0xd2   :  { %2154 = dma.done.wait [#allocation6], 32  }
  0xd3   :  { %2155 = vsyncadd [#allocation6], 4294967264 }
  0xd4   :  { %2156 = dma.done.wait [#allocation9], 512  }
  0xd5   :  { %2157 = vsyncadd [#allocation9], 4294966784 }
  0xd6   :  { %2158 = dma.done.wait [#allocation12], 32  }
  0xd7   :  { %2159 = vsyncadd [#allocation12], 4294967264 }
  0xd8   :  { %2160 = dma.done.wait [#allocation15], 272  }
  0xd9   :  { %2161 = vsyncadd [#allocation15], 4294967024 }
  0xda   :  { %2162 = dma.done.wait [#allocation18], 1040  }
  0xdb   :  { %2163 = vsyncadd [#allocation18], 4294966256 }
  0xdc   :  { %2164 = dma.done.wait [#allocation21], 16  }
  0xdd   :  { %2165 = vsyncadd [#allocation21], 4294967280  ;;  %vm196_vm0 = vcmask 261120   ;;  %v2445_v0 = vld [vmem:[#allocation2] sm:$0xff]  ;;  %v2447_v1 = vld [vmem:[#allocation2 + $0x8] sm:$0xff]  ;;  %v2184_v15 = vmov 0.0  }
  0xde   :  { %v197_v2 = vsel %vm196_vm0, %v2445_v0, 0.0  ;;  %v200_v3 = vsel %vm196_vm0, %v2447_v1, 0.0  ;;  %v1808_v14 = vld [vmem:[#allocation8] sm:$0xff]   ;;  %1643 = vmatprep.subr.bf16.mxu0 %v2184_v15  ;;  %1663 = vmatprep.subr.bf16.mxu1 %v2184_v15  ;;  %v1809_v16 = vld [vmem:[#allocation8 + $0x8] sm:$0xff]   ;;  %vm2185_vm1 = vmmov 0   ;;  %s2186_s11 = smov 112  }
  0xdf   :  { %198 = vadd.xlane.f32.xlu0 %v197_v2  ;;  %1644 = vmatpush3.bf16.msra.mxu0 %v1808_v14  ;;  %v1543_v25 = vld [vmem:[#allocation5] ss:$0 sm:$0xff]  ;;  %v1544_v29 = vld [vmem:[#allocation7] ss:$0 sm:$0xff]  ;;  %s2187_s14 = smov 120   ;;  %s2188_s16 = smov 104  }
  0xe0   :  { %1647 = vmatprep.mubr.msk.bf16.mxu0 %vm2185_vm1, %v2184_v15  ;;  %1645 = vmatprep.subr.bf16.mxu0 %v2184_v15  ;;  %s2189_s18 = smov 96   ;;  %vm327_vm2 = vcmask 64512   ;;  %vm811_vm3 = vcmask 1043456   ;;  %s2191_s19 = smov 24   ;;  %vm1207_vm4 = vcmask 130048   ;;  %vm1210_vm5 = vcmask 195584  }
  0xe1   :  { %1665 = vmatprep.mubr.msk.bf16.mxu1 %vm2185_vm1, %v2184_v15  ;;  %s2192_s0 = smov [#allocation22]  }
  0xe2   :  { %s1525_s3 = sshll.u32 %s2192_s0, 4  ;;  %s1526_s3 = int_to_ptr.vmem [resolvable:$true] %s1525_s3 }
  0xe3   :  { %201 = vadd.xlane.f32.xlu0 %v200_v3  ;;  %1646 = vmatpush3.bf16.msra.mxu0 %v1809_v16  ;;  %s2130_s5 = scalar_lea.vmem %s1526_s3, 256  ;;  %p2135_p13 = scmp.lt.s32.totalorder %s1526_s3, %s1526_s3 }
  0xe4   :  { %1651 = vmatprep.subr.bf16.mxu0 %v2184_v15  ;;  %p2131_p12 = scmp.ne.s32.totalorder %s1526_s3, %s2130_s5  ;;  %p2136_p0 = scmp.lt.s32.totalorder %s2130_s5, %s2130_s5 }
  0xe6   :  { %p2137_p1 = por %p2136_p0, %p2135_p13 }
  0xe8   :  { %p2138_p2 = pnand %p2137_p1, %p2131_p12 }
 0x16c   :  { %v199_v4 = vpop.xlane.xlu0 %198 }
 0x16d   :  { %v204_v5 = vmul.f32 0.03125, %v199_v4 }
 0x16f   :  { %v206_v6 = vsub.f32 %v2445_v0, %v204_v5 }
 0x170   :  { %v202_v7 = vpop.xlane.xlu0 %201 }
 0x171   :  { %v205_v8 = vmul.f32 0.03125, %v202_v7  ;;  %v208_v9 = vmul.f32 %v206_v6, %v206_v6 }
 0x173   :  { %v207_v10 = vsub.f32 %v2447_v1, %v205_v8  ;;  %v210_v11 = vsel %vm196_vm0, %v208_v9, 0.0 }
 0x174   :  { %211 = vadd.xlane.f32.xlu1 %v210_v11 }
 0x175   :  { %v209_v12 = vmul.f32 %v207_v10, %v207_v10 }
 0x177   :  { %v213_v13 = vsel %vm196_vm0, %v209_v12, 0.0 }
 0x178   :  { %214 = vadd.xlane.f32.xlu1 %v213_v13 }
 0x201   :  { %v212_v17 = vpop.xlane.xlu1 %211 }
 0x202   :  { %v216_v18 = vmul.f32 0.03125, %v212_v17 }
 0x204   :  { %v218_v19 = vadd.f32 1e-05, %v216_v18 }
 0x205   :  { %v215_v20 = vpop.xlane.xlu1 %214 }
 0x206   :  { %1822 = vrsqrt.f32 %v218_v19  ;;  %v217_v21 = vmul.f32 0.03125, %v215_v20 }
 0x208   :  { %v219_v22 = vadd.f32 1e-05, %v217_v21 }
 0x20a   :  { %1824 = vrsqrt.f32 %v219_v22 }
 0x210   :  { %v1823_v23 = vpop.eup %1822 }
 0x211   :  { %v222_v24 = vmul.f32 %v1823_v23, %v206_v6 }
 0x213   :  { %v230_v28 = vmul.f32 %v1543_v25, %v222_v24 }
 0x214   :  { %v1825_v26 = vpop.eup %1824 }
 0x215   :  { %v223_v27 = vmul.f32 %v1825_v26, %v207_v10  ;;  %v238_v31 = vadd.f32 %v1544_v29, %v230_v28 }
 0x217   :  { %v231_v30 = vmul.f32 %v1543_v25, %v223_v27 }
 0x219   :  { %v239_v32 = vadd.f32 %v1544_v29, %v231_v30 }
 0x21b   :  { %v240_v33 = vpack.c.bf16 %v239_v32, %v238_v31 }
 0x21d   :  { %1648 = vmatmul.mubr.msk.bf16.vlgmr.msra.gmra.mrb[0].mxu0 %vm196_vm0, %v240_v33 }
 0x21e   :  { %1653 = vmatprep.mubr.msk.bf16.mxu0 %vm2185_vm1, %v2184_v15 }
 0x2f0   :  { %v294_v34 = vpop.f32.mrb[0].mxu0 }
 0x2f1   :  { %v1649_v35 = vpop.f32.mrb[1].mxu0  ;;  %v1591_v40 = vpack.c.bf16 %v294_v34, %v294_v34 }
 0x2f2   :  { %v297_v36 = vpop.f32.mrb[2].mxu0 }
 0x2f3   :  { %v301_v37 = vpack.c.bf16 %v297_v36, %v294_v34  ;;  %v1650_v38 = vpop.f32.mrb[3].mxu0  ;;  %v2468_v39 = vpack.c.bf16 %v297_v36, %v297_v36 }
 0x2f5   :  { %305 = vrot.lane.b32.xlu1 %v301_v37, %s2186_s11  ;;  %303 = vrot.lane.b32.xlu0 %v301_v37, %s2187_s14 }
 0x2f9   :  { %307 = vrot.lane.b32.xlu1 %v301_v37, %s2188_s16  ;;  %374 = vrot.lane.b32.xlu0 %v2468_v39, %s2189_s18 }
 0x2fd   :  { %325 = vrot.lane.b32.xlu1 %v1591_v40, %s2189_s18 }
 0x367   :  { %v306_v41 = vpop.permute.xlu1 %305  ;;  %v304_v42 = vpop.permute.xlu0 %303 }
 0x368   :  { %v2471_v43 = vcombine.low %v304_v42, %v304_v42  ;;  %v2473_v44 = vcombine.high %v304_v42, %v304_v42  ;;  %v2477_v46 = vcombine.low %v306_v41, %v306_v41  ;;  %v2479_v47 = vcombine.high %v306_v41, %v306_v41 }
 0x36a   :  { %470 = vrot.lane.b32.xlu0 %v2473_v44, %s2189_s18  ;;  %422 = vrot.lane.b32.xlu1 %v2471_v43, %s2189_s18 }
 0x36b   :  { %v308_v45 = vpop.permute.xlu1 %307  ;;  %v375_v52 = vpop.permute.xlu0 %374 }
 0x36c   :  { %v2483_v49 = vcombine.low %v308_v45, %v308_v45  ;;  %v2485_v50 = vcombine.high %v308_v45, %v308_v45  ;;  %v380_v53 = vsel %vm327_vm2, %v375_v52, 0 }
 0x36e   :  { %566 = vrot.lane.b32.xlu0 %v2479_v47, %s2189_s18  ;;  %518 = vrot.lane.b32.xlu1 %v2477_v46, %s2189_s18 }
 0x36f   :  { %v326_v48 = vpop.permute.xlu1 %325 }
 0x370   :  { %v332_v51 = vsel %vm327_vm2, %v326_v48, 0 }
 0x371   :  { %1652 = vmatpush3.bf16.xpose.msra.mxu0 %v332_v51 }
 0x372   :  { %662 = vrot.lane.b32.xlu0 %v2485_v50, %s2189_s18  ;;  %614 = vrot.lane.b32.xlu1 %v2483_v49, %s2189_s18 }
 0x373   :  { %1657 = vmatprep.subr.bf16.mxu0 %v2184_v15 }
 0x376   :  { %806 = vrot.lane.b32.xlu1 %v1591_v40, %s2170_s1 }
 0x378   :  { %1654 = vmatmul.mubr.msk.bf16.vlgmr.msra.gmra.mrb[4].mxu0 %vm327_vm2, %v1591_v40 }
 0x379   :  { %1658 = vmatpush3.bf16.xpose.msra.mxu0 %v380_v53  ;;  %1659 = vmatprep.mubr.msk.bf16.mxu0 %vm2185_vm1, %v2184_v15 }
 0x37a   :  { %1669 = vmatprep.subr.bf16.mxu0 %v2184_v15 }
 0x380   :  { %1660 = vmatmul.mubr.msk.bf16.vlgmr.msra.gmra.mrb[8].mxu0 %vm327_vm2, %v2468_v39 }
 0x381   :  { %1671 = vmatprep.mubr.msk.bf16.mxu0 %vm2185_vm1, %v2184_v15 }
 0x3dc   :  { %v423_v54 = vpop.permute.xlu1 %422  ;;  %v471_v55 = vpop.permute.xlu0 %470 }
 0x3dd   :  { %v476_v56 = vsel %vm327_vm2, %v471_v55, 0  ;;  %v428_v57 = vsel %vm327_vm2, %v423_v54, 0 }
 0x3de   :  { %1664 = vmatpush3.bf16.xpose.msra.mxu1 %v428_v57  ;;  %1670 = vmatpush3.bf16.xpose.msra.mxu0 %v476_v56 }
 0x3df   :  { %1675 = vmatprep.subr.bf16.mxu1 %v2184_v15  ;;  %1681 = vmatprep.subr.bf16.mxu0 %v2184_v15 }
 0x3e0   :  { %v519_v58 = vpop.permute.xlu1 %518  ;;  %v567_v59 = vpop.permute.xlu0 %566 }
 0x3e1   :  { %v524_v60 = vsel %vm327_vm2, %v519_v58, 0  ;;  %v572_v61 = vsel %vm327_vm2, %v567_v59, 0 }
 0x3e4   :  { %v615_v62 = vpop.permute.xlu1 %614  ;;  %v663_v63 = vpop.permute.xlu0 %662 }
 0x3e5   :  { %1666 = vmatmul.mubr.msk.bf16.vlgmr.msra.gmra.mrb[0].mxu1 %vm327_vm2, %v2471_v43  ;;  %1672 = vmatmul.mubr.msk.bf16.vlgmr.msra.gmra.mrb[12].mxu0 %vm327_vm2, %v2473_v44  ;;  %v620_v2 = vsel %vm327_vm2, %v615_v62, 0  ;;  %v668_v3 = vsel %vm327_vm2, %v663_v63, 0 }
 0x3e6   :  { %1676 = vmatpush3.bf16.xpose.msra.mxu1 %v524_v60  ;;  %1682 = vmatpush3.bf16.xpose.msra.mxu0 %v572_v61 }
 0x3e7   :  { %1677 = vmatprep.mubr.msk.bf16.mxu1 %vm2185_vm1, %v2184_v15  ;;  %1683 = vmatprep.mubr.msk.bf16.mxu0 %vm2185_vm1, %v2184_v15 }
 0x3e8   :  { %1687 = vmatprep.subr.bf16.mxu1 %v2184_v15  ;;  %1693 = vmatprep.subr.bf16.mxu0 %v2184_v15  ;;  %v807_v4 = vpop.permute.xlu1 %806 }
 0x3e9   :  { %v813_v5 = vsel %vm811_vm3, %v807_v4, 0 }
 0x3ed   :  { %1678 = vmatmul.mubr.msk.bf16.vlgmr.msra.gmra.mrb[4].mxu1 %vm327_vm2, %v2477_v46  ;;  %1684 = vmatmul.mubr.msk.bf16.vlgmr.msra.gmra.mrb[16].mxu0 %vm327_vm2, %v2479_v47 }
 0x3ee   :  { %1688 = vmatpush3.bf16.xpose.msra.mxu1 %v620_v2  ;;  %1694 = vmatpush3.bf16.xpose.msra.mxu0 %v668_v3 }
 0x3ef   :  { %1689 = vmatprep.mubr.msk.bf16.mxu1 %vm2185_vm1, %v2184_v15  ;;  %1695 = vmatprep.mubr.msk.bf16.mxu0 %vm2185_vm1, %v2184_v15 }
 0x3f0   :  { %1699 = vmatprep.subr.bf16.mxu1 %v2184_v15  ;;  %1705 = vmatprep.subr.bf16.mxu0 %v2184_v15 }
 0x3f5   :  { %1690 = vmatmul.mubr.msk.bf16.vlgmr.msra.gmra.mrb[8].mxu1 %vm327_vm2, %v2483_v49  ;;  %1696 = vmatmul.mubr.msk.bf16.vlgmr.msra.gmra.mrb[20].mxu0 %vm327_vm2, %v2485_v50 }
 0x3f6   :  { %1700 = vmatpush3.bf16.msra.mxu1 %v813_v5  ;;  %1707 = vmatprep.mubr.msk.bf16.mxu0 %vm2185_vm1, %v2184_v15 }
 0x3f7   :  { %1701 = vmatprep.mubr.msk.bf16.mxu1 %vm2185_vm1, %v2184_v15  ;;  %1711 = vmatprep.subr.bf16.mxu1 %v2184_v15 }
 0x44b   :  { %v368_v6 = vpop.f32.mrb[4].mxu0 }
 0x44c   :  { %v1655_v7 = vpop.f32.mrb[5].mxu0  ;;  %v710_v8 = vsel %vm327_vm2, %v368_v6, -inf }
 0x44d   :  { %711 = vmax.xlane.f32.xlu1 %v710_v8  ;;  %v371_v9 = vpop.f32.mrb[6].mxu0 }
 0x44e   :  { %v1656_v10 = vpop.f32.mrb[7].mxu0 }
 0x453   :  { %v416_v11 = vpop.f32.mrb[8].mxu0 }
 0x454   :  { %v1661_v12 = vpop.f32.mrb[9].mxu0  ;;  %v713_v13 = vsel %vm327_vm2, %v416_v11, -inf }
 0x455   :  { %714 = vmax.xlane.f32.xlu0 %v713_v13  ;;  %v419_v14 = vpop.f32.mrb[10].mxu0 }
 0x456   :  { %v1662_v16 = vpop.f32.mrb[11].mxu0 }
 0x4b8   :  { %v464_v17 = vpop.f32.mrb[0].mxu1  ;;  %v512_v18 = vpop.f32.mrb[12].mxu0 }
 0x4b9   :  { %v1667_v19 = vpop.f32.mrb[1].mxu1  ;;  %v1673_v20 = vpop.f32.mrb[13].mxu0  ;;  %v716_v21 = vsel %vm327_vm2, %v464_v17, -inf  ;;  %v719_v26 = vsel %vm327_vm2, %v512_v18, -inf }
 0x4ba   :  { %v467_v22 = vpop.f32.mrb[2].mxu1  ;;  %717 = vmax.xlane.f32.xlu0 %v716_v21  ;;  %v515_v23 = vpop.f32.mrb[14].mxu0 }
 0x4bb   :  { %v1668_v24 = vpop.f32.mrb[3].mxu1  ;;  %v1674_v25 = vpop.f32.mrb[15].mxu0 }
 0x4be   :  { %720 = vmax.xlane.f32.xlu0 %v719_v26 }
 0x4c0   :  { %v560_v27 = vpop.f32.mrb[4].mxu1  ;;  %v2543_v28 = vpop.f32.mrb[16].mxu0 }
 0x4c1   :  { %v1679_v29 = vpop.f32.mrb[5].mxu1  ;;  %v1685_v30 = vpop.f32.mrb[17].mxu0  ;;  %v722_v31 = vsel %vm327_vm2, %v560_v27, -inf  ;;  %v725_v32 = vsel %vm327_vm2, %v2543_v28, -inf }
 0x4c2   :  { %v563_v33 = vpop.f32.mrb[6].mxu1  ;;  %723 = vmax.xlane.f32.xlu1 %v722_v31  ;;  %726 = vmax.xlane.f32.xlu0 %v725_v32  ;;  %v611_v34 = vpop.f32.mrb[18].mxu0 }
 0x4c3   :  { %v1680_v35 = vpop.f32.mrb[7].mxu1  ;;  %v1686_v36 = vpop.f32.mrb[19].mxu0 }
 0x4c8   :  { %v656_v37 = vpop.f32.mrb[8].mxu1  ;;  %v2548_v38 = vpop.f32.mrb[20].mxu0 }
 0x4c9   :  { %v1691_v40 = vpop.f32.mrb[9].mxu1  ;;  %v1697_v41 = vpop.f32.mrb[21].mxu0  ;;  %v728_v42 = vsel %vm327_vm2, %v656_v37, -inf  ;;  %v731_v45 = vsel %vm327_vm2, %v2548_v38, -inf }
 0x4ca   :  { %v659_v48 = vpop.f32.mrb[10].mxu1  ;;  %729 = vmax.xlane.f32.xlu1 %v728_v42  ;;  %732 = vmax.xlane.f32.xlu0 %v731_v45  ;;  %v707_v51 = vpop.f32.mrb[22].mxu0 }
 0x4cb   :  { %v1692_v52 = vpop.f32.mrb[11].mxu1  ;;  %v1698_v53 = vpop.f32.mrb[23].mxu0 }
 0x4da   :  { %v712_v56 = vpop.xlane.xlu1 %711 }
 0x4db   :  { %903 = vrot.lane.b32.xlu1 %v2471_v43, %s2170_s1  ;;  %v734_v57 = vsub.f32 %v368_v6, %v712_v56 }
 0x4dd   :  { %v742_v59 = vmul.f32 1.442695, %v734_v57 }
 0x4df   :  { %951 = vrot.lane.b32.xlu1 %v2473_v44, %s2170_s1 }
 0x4e0   :  { %855 = vrot.lane.b32.xlu0 %v2468_v39, %s2170_s1 }
 0x4e2   :  { %v715_v54 = vpop.xlane.xlu0 %714 }
 0x4e3   :  { %v735_v55 = vsub.f32 %v416_v11, %v715_v54 }
 0x4e5   :  { %v744_v58 = vmul.f32 1.442695, %v735_v55 }
 0x4e7   :  { %1826 = vpow2.f32 %v744_v58 }
 0x4e8   :  { %1828 = vpow2.f32 %v742_v59 }
 0x4f1   :  { %v1827_v60 = vpop.eup %1826 }
 0x4f2   :  { %v761_v61 = vsel %vm327_vm2, %v1827_v60, 0.0  ;;  %v2560_v62 = vpop.eup %1828 }
 0x4f3   :  { %v758_v43 = vsel %vm327_vm2, %v2560_v62, 0.0 }
 0x4ff   :  { %762 = vadd.xlane.f32.xlu0 %v761_v61 }
 0x503   :  { %759 = vadd.xlane.f32.xlu1 %v758_v43 }
 0x514   :  { %999 = vrot.lane.b32.xlu1 %v2477_v46, %s2170_s1 }
 0x547   :  { %v718_v39 = vpop.xlane.xlu0 %717 }
 0x548   :  { %v736_v44 = vsub.f32 %v464_v17, %v718_v39 }
 0x54a   :  { %v746_v63 = vmul.f32 1.442695, %v736_v44 }
 0x54b   :  { %v721_v2 = vpop.xlane.xlu0 %720 }
 0x54c   :  { %1830 = vpow2.f32 %v746_v63  ;;  %v737_v3 = vsub.f32 %v512_v18, %v721_v2 }
 0x54e   :  { %v748_v4 = vmul.f32 1.442695, %v737_v3 }
 0x54f   :  { %v724_v5 = vpop.xlane.xlu1 %723  ;;  %v727_v8 = vpop.xlane.xlu0 %726 }
 0x550   :  { %1832 = vpow2.f32 %v748_v4  ;;  %v738_v6 = vsub.f32 %v560_v27, %v724_v5  ;;  %v739_v23 = vsub.f32 %v2543_v28, %v727_v8 }
 0x552   :  { %v750_v7 = vmul.f32 1.442695, %v738_v6  ;;  %v752_v24 = vmul.f32 1.442695, %v739_v23 }
 0x554   :  { %1834 = vpow2.f32 %v750_v7 }
 0x556   :  { %v2566_v9 = vpop.eup %1830 }
 0x557   :  { %v730_v10 = vpop.xlane.xlu1 %729  ;;  %v733_v11 = vpop.xlane.xlu0 %732  ;;  %v764_v46 = vsel %vm327_vm2, %v2566_v9, 0.0 }
 0x558   :  { %v740_v12 = vsub.f32 %v656_v37, %v730_v10  ;;  %765 = vadd.xlane.f32.xlu1 %v764_v46  ;;  %v741_v25 = vsub.f32 %v2548_v38, %v733_v11 }
 0x55a   :  { %v2570_v13 = vpop.eup %1832  ;;  %v754_v14 = vmul.f32 1.442695, %v740_v12  ;;  %v756_v26 = vmul.f32 1.442695, %v741_v25 }
 0x55b   :  { %v856_v16 = vpop.permute.xlu0 %855  ;;  %v767_v17 = vsel %vm327_vm2, %v2570_v13, 0.0  ;;  %v904_v27 = vpop.permute.xlu1 %903 }
 0x55c   :  { %1836 = vpow2.f32 %v754_v14  ;;  %v861_v18 = vsel %vm811_vm3, %v856_v16, 0  ;;  %768 = vadd.xlane.f32.xlu0 %v767_v17  ;;  %v909_v41 = vsel %vm811_vm3, %v904_v27, 0 }
 0x55d   :  { %1706 = vmatpush3.bf16.msra.mxu0 %v861_v18  ;;  %1838 = vpow2.f32 %v752_v24 }
 0x55e   :  { %v2575_v19 = vpop.eup %1834  ;;  %1717 = vmatprep.subr.bf16.mxu0 %v2184_v15  ;;  %1840 = vpow2.f32 %v756_v26 }
 0x55f   :  { %v770_v20 = vsel %vm327_vm2, %v2575_v19, 0.0  ;;  %v952_v29 = vpop.permute.xlu1 %951 }
 0x560   :  { %771 = vadd.xlane.f32.xlu1 %v770_v20  ;;  %v957_v37 = vsel %vm811_vm3, %v952_v29, 0 }
 0x566   :  { %v2580_v21 = vpop.eup %1836 }
 0x567   :  { %v776_v22 = vsel %vm327_vm2, %v2580_v21, 0.0  ;;  %v2590_v31 = vpop.eup %1838 }
 0x568   :  { %777 = vadd.xlane.f32.xlu1 %v776_v22  ;;  %v2594_v33 = vpop.eup %1840 }
 0x572   :  { %1047 = vrot.lane.b32.xlu0 %v2479_v47, %s2170_s1  ;;  %v773_v47 = vsel %vm327_vm2, %v2590_v31, 0.0 }
 0x579   :  { %1095 = vrot.lane.b32.xlu1 %v2483_v49, %s2170_s1  ;;  %v779_v49 = vsel %vm327_vm2, %v2594_v33, 0.0 }
 0x58c   :  { %v763_v30 = vpop.xlane.xlu0 %762 }
 0x58d   :  { %1842 = vrcp.f32 %v763_v30 }
 0x590   :  { %v760_v32 = vpop.xlane.xlu1 %759 }
 0x591   :  { %1844 = vrcp.f32 %v760_v32  ;;  %774 = vadd.xlane.f32.xlu0 %v773_v47 }
 0x594   :  { %v1000_v42 = vpop.permute.xlu1 %999 }
 0x595   :  { %780 = vadd.xlane.f32.xlu0 %v779_v49  ;;  %v1005_v56 = vsel %vm811_vm3, %v1000_v42, 0 }
 0x597   :  { %v1843_v28 = vpop.eup %1842 }
 0x598   :  { %v791_v34 = vmul.f32 %v1843_v28, %v1827_v60 }
 0x59a   :  { %v799_v35 = vpack.c.bf16 %v791_v34, %v791_v34 }
 0x59b   :  { %v1845_v36 = vpop.eup %1844 }
 0x59c   :  { %v790_v38 = vmul.f32 %v1845_v36, %v2560_v62  ;;  %1708 = vmatmul.mubr.msk.bf16.vlgmr.msra.gmra.mrb[24].mxu0 %vm327_vm2, %v799_v35 }
 0x59d   :  { %1718 = vmatpush3.bf16.msra.mxu0 %v957_v37  ;;  %1719 = vmatprep.mubr.msk.bf16.mxu0 %vm2185_vm1, %v2184_v15 }
 0x59e   :  { %v798_v40 = vpack.c.bf16 %v790_v38, %v790_v38  ;;  %1729 = vmatprep.subr.bf16.mxu0 %v2184_v15  ;;  %v1810_v38 = vld [vmem:[#allocation10] sm:$0xff]  }
 0x5a0   :  { %1702 = vmatmul.mubr.msk.bf16.vlgmr.msra.gmra.mrb[12].mxu1 %vm327_vm2, %v798_v40  ;;  %v1811_v40 = vld [vmem:[#allocation10 + $0x8] sm:$0xff]  }
 0x5a1   :  { %1712 = vmatpush3.bf16.msra.mxu1 %v909_v41  ;;  %1713 = vmatprep.mubr.msk.bf16.mxu1 %vm2185_vm1, %v2184_v15 }
 0x5a2   :  { %1723 = vmatprep.subr.bf16.mxu1 %v2184_v15 }
 0x5ab   :  { %1143 = vrot.lane.b32.xlu0 %v2485_v50, %s2170_s1  ;;  %s2190_s1 = smov 16  }
 0x5e5   :  { %v766_v45 = vpop.xlane.xlu1 %765 }
 0x5e6   :  { %1846 = vrcp.f32 %v766_v45 }
 0x5e9   :  { %v769_v48 = vpop.xlane.xlu0 %768 }
 0x5ea   :  { %1848 = vrcp.f32 %v769_v48 }
 0x5ed   :  { %v772_v51 = vpop.xlane.xlu1 %771  ;;  %v1048_v50 = vpop.permute.xlu0 %1047 }
 0x5ee   :  { %1850 = vrcp.f32 %v772_v51  ;;  %v1053_v62 = vsel %vm811_vm3, %v1048_v50, 0 }
 0x5f0   :  { %v1847_v52 = vpop.eup %1846 }
 0x5f1   :  { %v792_v53 = vmul.f32 %v1847_v52, %v2566_v9 }
 0x5f3   :  { %v800_v54 = vpack.c.bf16 %v792_v53, %v792_v53 }
 0x5f4   :  { %v1849_v55 = vpop.eup %1848 }
 0x5f5   :  { %v793_v57 = vmul.f32 %v1849_v55, %v2570_v13  ;;  %1714 = vmatmul.mubr.msk.bf16.vlgmr.msra.gmra.mrb[16].mxu1 %vm327_vm2, %v800_v54  ;;  %v778_v58 = vpop.xlane.xlu1 %777 }
 0x5f6   :  { %1724 = vmatpush3.bf16.msra.mxu1 %v1005_v56  ;;  %1852 = vrcp.f32 %v778_v58  ;;  %1725 = vmatprep.mubr.msk.bf16.mxu1 %vm2185_vm1, %v2184_v15 }
 0x5f7   :  { %v801_v59 = vpack.c.bf16 %v793_v57, %v793_v57  ;;  %1735 = vmatprep.subr.bf16.mxu1 %v2184_v15 }
 0x5f8   :  { %v1851_v60 = vpop.eup %1850 }
 0x5f9   :  { %v794_v61 = vmul.f32 %v1851_v60, %v2575_v19  ;;  %1720 = vmatmul.mubr.msk.bf16.vlgmr.msra.gmra.mrb[28].mxu0 %vm327_vm2, %v801_v59  ;;  %v1096_v43 = vpop.permute.xlu1 %1095 }
 0x5fa   :  { %1730 = vmatpush3.bf16.msra.mxu0 %v1053_v62  ;;  %1731 = vmatprep.mubr.msk.bf16.mxu0 %vm2185_vm1, %v2184_v15  ;;  %v1101_v44 = vsel %vm811_vm3, %v1096_v43, 0  ;;  %v1572_v62 = vld [vmem:[#allocation11] ss:$0 sm:$0xff] }
 0x5fb   :  { %v802_v39 = vpack.c.bf16 %v794_v61, %v794_v61  ;;  %1741 = vmatprep.subr.bf16.mxu0 %v2184_v15 }
 0x5fd   :  { %1726 = vmatmul.mubr.msk.bf16.vlgmr.msra.gmra.mrb[20].mxu1 %vm327_vm2, %v802_v39 }
 0x5fe   :  { %1736 = vmatpush3.bf16.msra.mxu1 %v1101_v44  ;;  %1737 = vmatprep.mubr.msk.bf16.mxu1 %vm2185_vm1, %v2184_v15 }
 0x5ff   :  { %1747 = vmatprep.subr.bf16.mxu1 %v2184_v15 }
 0x600   :  { %v1853_v63 = vpop.eup %1852 }
 0x601   :  { %v796_v2 = vmul.f32 %v1853_v63, %v2580_v21 }
 0x603   :  { %v804_v3 = vpack.c.bf16 %v796_v2, %v796_v2 }
 0x605   :  { %1738 = vmatmul.mubr.msk.bf16.vlgmr.msra.gmra.mrb[24].mxu1 %vm327_vm2, %v804_v3 }
 0x606   :  { %1751 = vmatprep.mubr.msk.bf16.mxu1 %vm2185_vm1, %v2184_v15  ;;  %1748 = vmatpush3.bf16.msra.mxu1 %v1810_v38  ;;  %v1819_v38 = vld [vmem:[#allocation19 + $0x28] sm:$0xff]  }
 0x607   :  { %1749 = vmatprep.subr.bf16.mxu1 %v2184_v15 }
 0x60a   :  { %1750 = vmatpush3.bf16.msra.mxu1 %v1811_v40  ;;  %v1820_v40 = vld [vmem:[#allocation19 + $0x30] sm:$0xff]  }
 0x60b   :  { %1763 = vmatprep.subr.bf16.mxu1 %v2184_v15 }
 0x61e   :  { %v775_v4 = vpop.xlane.xlu0 %774 }
 0x61f   :  { %1854 = vrcp.f32 %v775_v4 }
 0x622   :  { %v781_v5 = vpop.xlane.xlu0 %780 }
 0x623   :  { %1856 = vrcp.f32 %v781_v5 }
 0x626   :  { %v1144_v8 = vpop.permute.xlu0 %1143 }
 0x627   :  { %v1149_v11 = vsel %vm811_vm3, %v1144_v8, 0 }
 0x629   :  { %v1855_v6 = vpop.eup %1854 }
 0x62a   :  { %v795_v7 = vmul.f32 %v1855_v6, %v2590_v31 }
 0x62c   :  { %v803_v9 = vpack.c.bf16 %v795_v7, %v795_v7 }
 0x62d   :  { %v1857_v10 = vpop.eup %1856 }
 0x62e   :  { %1732 = vmatmul.mubr.msk.bf16.vlgmr.msra.gmra.mrb[32].mxu0 %vm327_vm2, %v803_v9  ;;  %v797_v46 = vmul.f32 %v1857_v10, %v2594_v33 }
 0x62f   :  { %1742 = vmatpush3.bf16.msra.mxu0 %v1149_v11  ;;  %1743 = vmatprep.mubr.msk.bf16.mxu0 %vm2185_vm1, %v2184_v15 }
 0x630   :  { %1755 = vmatprep.subr.bf16.mxu0 %v2184_v15  ;;  %v805_v12 = vpack.c.bf16 %v797_v46, %v797_v46 }
 0x636   :  { %1744 = vmatmul.mubr.msk.bf16.vlgmr.msra.gmra.mrb[36].mxu0 %vm327_vm2, %v805_v12 }
 0x637   :  { %1759 = vmatprep.mubr.msk.bf16.mxu0 %vm2185_vm1, %v2184_v15 }
 0x66f   :  { %v897_v13 = vpop.f32.mrb[24].mxu0 }
 0x670   :  { %v1709_v14 = vpop.f32.mrb[25].mxu0 }
 0x671   :  { %v900_v16 = vpop.f32.mrb[26].mxu0 }
 0x672   :  { %v1710_v17 = vpop.f32.mrb[27].mxu0  ;;  %v1812_v16 = vld [vmem:[#allocation16] sm:$0xff]  }
 0x673   :  { %v849_v18 = vpop.f32.mrb[12].mxu1  ;;  %1756 = vmatpush3.bf16.msra.mxu0 %v1812_v16  ;;  %v1813_v17 = vld [vmem:[#allocation16 + $0x8] sm:$0xff]  }
 0x674   :  { %v1191_v19 = vpack.c.bf16 %v897_v13, %v849_v18  ;;  %v1703_v20 = vpop.f32.mrb[13].mxu1  ;;  %1757 = vmatprep.subr.bf16.mxu0 %v2184_v15  ;;  %v1814_v18 = vld [vmem:[#allocation19] sm:$0xff]  }
 0x675   :  { %v852_v21 = vpop.f32.mrb[14].mxu1 }
 0x676   :  { %v1704_v22 = vpop.f32.mrb[15].mxu1 }
 0x677   :  { %1758 = vmatpush3.bf16.msra.mxu0 %v1813_v17 }
 0x6c8   :  { %v945_v23 = vpop.f32.mrb[16].mxu1 }
 0x6c9   :  { %v1715_v24 = vpop.f32.mrb[17].mxu1 }
 0x6ca   :  { %v948_v25 = vpop.f32.mrb[18].mxu1 }
 0x6cb   :  { %v1716_v26 = vpop.f32.mrb[19].mxu1 }
 0x6cc   :  { %v993_v27 = vpop.f32.mrb[28].mxu0 }
 0x6cd   :  { %v1192_v29 = vpack.c.bf16 %v993_v27, %v945_v23  ;;  %v1721_v30 = vpop.f32.mrb[29].mxu0 }
 0x6ce   :  { %v996_v31 = vpop.f32.mrb[30].mxu0 }
 0x6cf   :  { %1196 = vrot.lane.b32.xlu1 %v1192_v29, %s2177_s21  ;;  %v1722_v32 = vpop.f32.mrb[31].mxu0  ;;  %v1576_v29 = vld [vmem:[#allocation13] ss:$0 sm:$0xff] }
 0x6d0   :  { %v1041_v47 = vpop.f32.mrb[20].mxu1 }
 0x6d1   :  { %v1727_v33 = vpop.f32.mrb[21].mxu1 }
 0x6d2   :  { %v1044_v49 = vpop.f32.mrb[22].mxu1 }
 0x6d3   :  { %v1728_v28 = vpop.f32.mrb[23].mxu1 }
 0x6d8   :  { %v1137_v34 = vpop.f32.mrb[24].mxu1 }
 0x6d9   :  { %v1739_v35 = vpop.f32.mrb[25].mxu1 }
 0x6da   :  { %v1140_v36 = vpop.f32.mrb[26].mxu1  ;;  %v1816_v35 = vld [vmem:[#allocation19 + $0x10] sm:$0xff]  }
 0x6db   :  { %v1740_v37 = vpop.f32.mrb[27].mxu1  ;;  %v1817_v36 = vld [vmem:[#allocation19 + $0x18] sm:$0xff]  }
 0x6dc   :  { %v1818_v37 = vld [vmem:[#allocation19 + $0x20] sm:$0xff]  }
 0x701   :  { %v1089_v41 = vpop.f32.mrb[32].mxu0 }
 0x702   :  { %v1193_v42 = vpack.c.bf16 %v1089_v41, %v1041_v47  ;;  %v1733_v45 = vpop.f32.mrb[33].mxu0  ;;  %v1577_v47 = vld [vmem:[#allocation14] ss:$0 sm:$0xff]  ;;  %v1821_v41 = vld [vmem:[#allocation19 + $0x38] sm:$0xff]  }
 0x703   :  { %v1092_v48 = vpop.f32.mrb[34].mxu0 }
 0x704   :  { %1199 = vrot.lane.b32.xlu0 %v1193_v42, %s2190_s1  ;;  %v1734_v51 = vpop.f32.mrb[35].mxu0  ;;  %v1578_v42 = vld [vmem:[#allocation17] ss:$0 sm:$0xff] }
 0x709   :  { %v1185_v52 = vpop.f32.mrb[36].mxu0 }
 0x70a   :  { %v1194_v53 = vpack.c.bf16 %v1185_v52, %v1137_v34  ;;  %v1745_v54 = vpop.f32.mrb[37].mxu0 }
 0x70b   :  { %v1188_v55 = vpop.f32.mrb[38].mxu0 }
 0x70c   :  { %1202 = vrot.lane.b32.xlu1 %v1194_v53, %s2191_s19  ;;  %v1746_v56 = vpop.f32.mrb[39].mxu0 }
 0x741   :  { %v1197_v57 = vpop.permute.xlu1 %1196 }
 0x742   :  { %v1206_v50 = vsel %vm327_vm2, %v1191_v19, %v1197_v57  ;;  %v1815_v19 = vld [vmem:[#allocation19 + $0x8] sm:$0xff]  }
 0x776   :  { %v1200_v58 = vpop.permute.xlu0 %1199 }
 0x777   :  { %v1209_v59 = vsel %vm1207_vm4, %v1206_v50, %v1200_v58 }
 0x77e   :  { %v1203_v60 = vpop.permute.xlu1 %1202 }
 0x77f   :  { %v1212_v61 = vsel %vm1210_vm5, %v1209_v59, %v1203_v60 }
 0x780   :  { %1752 = vmatmul.mubr.msk.bf16.vlgmr.msra.gmra.mrb[28].mxu1 %vm196_vm0, %v1212_v61 }
 0x781   :  { %1779 = vmatprep.mubr.msk.bf16.mxu1 %vm2185_vm1, %v2184_v15  ;;  %1764 = vmatpush3.bf16.msra.mxu1 %v1814_v18 }
 0x782   :  { %1765 = vmatprep.subr.bf16.mxu1 %v2184_v15 }
 0x785   :  { %1766 = vmatpush3.bf16.msra.mxu1 %v1815_v19 }
 0x786   :  { %1767 = vmatprep.subr.bf16.mxu1 %v2184_v15 }
 0x789   :  { %1768 = vmatpush3.bf16.msra.mxu1 %v1816_v35 }
 0x78a   :  { %1769 = vmatprep.subr.bf16.mxu1 %v2184_v15 }
 0x78d   :  { %1770 = vmatpush3.bf16.msra.mxu1 %v1817_v36 }
 0x78e   :  { %1771 = vmatprep.subr.bf16.mxu1 %v2184_v15 }
 0x791   :  { %1772 = vmatpush3.bf16.msra.mxu1 %v1818_v37 }
 0x792   :  { %1773 = vmatprep.subr.bf16.mxu1 %v2184_v15 }
 0x795   :  { %1774 = vmatpush3.bf16.msra.mxu1 %v1819_v38 }
 0x796   :  { %1775 = vmatprep.subr.bf16.mxu1 %v2184_v15 }
 0x799   :  { %1776 = vmatpush3.bf16.msra.mxu1 %v1820_v40 }
 0x79a   :  { %1777 = vmatprep.subr.bf16.mxu1 %v2184_v15 }
 0x79d   :  { %1778 = vmatpush3.bf16.msra.mxu1 %v1821_v41 }
 0x853   :  { %v1272_v43 = vpop.f32.mrb[28].mxu1 }
 0x854   :  { %v1273_v39 = vadd.f32 %v1572_v62, %v1272_v43  ;;  %v1753_v44 = vpop.f32.mrb[29].mxu1 }
 0x855   :  { %v1275_v63 = vpop.f32.mrb[30].mxu1 }
 0x856   :  { %v2651_v2 = vadd.f32 %v1273_v39, %v2445_v0  ;;  %v1276_v3 = vadd.f32 %v1572_v62, %v1275_v63  ;;  %v1754_v4 = vpop.f32.mrb[31].mxu1  ;;  %v1582_v39 = vld [vmem:[#allocation20] ss:$0 sm:$0xff] }
 0x858   :  { %v2654_v5 = vadd.f32 %v1276_v3, %v2447_v1  ;;  %v1283_v6 = vsel %vm196_vm0, %v2651_v2, 0.0 }
 0x859   :  { %1284 = vadd.xlane.f32.xlu0 %v1283_v6 }
 0x85a   :  { %v1286_v7 = vsel %vm196_vm0, %v2654_v5, 0.0 }
 0x85b   :  { %1287 = vadd.xlane.f32.xlu1 %v1286_v7 }
 0x8e6   :  { %v1285_v8 = vpop.xlane.xlu0 %1284 }
 0x8e7   :  { %v1289_v9 = vmul.f32 0.03125, %v1285_v8 }
 0x8e8   :  { %v1288_v10 = vpop.xlane.xlu1 %1287 }
 0x8e9   :  { %v1291_v11 = vsub.f32 %v2651_v2, %v1289_v9  ;;  %v1290_v0 = vmul.f32 0.03125, %v1288_v10 }
 0x8eb   :  { %v1292_v46 = vsub.f32 %v2654_v5, %v1290_v0  ;;  %v1293_v12 = vmul.f32 %v1291_v11, %v1291_v11 }
 0x8ed   :  { %v1295_v1 = vsel %vm196_vm0, %v1293_v12, 0.0  ;;  %v1294_v13 = vmul.f32 %v1292_v46, %v1292_v46 }
 0x8ee   :  { %1296 = vadd.xlane.f32.xlu0 %v1295_v1 }
 0x8ef   :  { %v1298_v14 = vsel %vm196_vm0, %v1294_v13, 0.0 }
 0x8f2   :  { %1299 = vadd.xlane.f32.xlu0 %v1298_v14 }
 0x97b   :  { %v1297_v20 = vpop.xlane.xlu0 %1296 }
 0x97c   :  { %v1301_v21 = vmul.f32 0.03125, %v1297_v20 }
 0x97e   :  { %v1303_v22 = vadd.f32 1e-05, %v1301_v21 }
 0x97f   :  { %v1300_v23 = vpop.xlane.xlu0 %1299 }
 0x980   :  { %1858 = vrsqrt.f32 %v1303_v22  ;;  %v1302_v24 = vmul.f32 0.03125, %v1300_v23 }
 0x982   :  { %v1304_v25 = vadd.f32 1e-05, %v1302_v24 }
 0x984   :  { %1860 = vrsqrt.f32 %v1304_v25 }
 0x98a   :  { %v1859_v26 = vpop.eup %1858 }
 0x98b   :  { %v1307_v27 = vmul.f32 %v1859_v26, %v1291_v11 }
 0x98d   :  { %v1315_v31 = vmul.f32 %v1576_v29, %v1307_v27 }
 0x98e   :  { %v1861_v30 = vpop.eup %1860 }
 0x98f   :  { %v1308_v32 = vmul.f32 %v1861_v30, %v1292_v46  ;;  %v1323_v49 = vadd.f32 %v1577_v47, %v1315_v31 }
 0x991   :  { %v1316_v33 = vmul.f32 %v1576_v29, %v1308_v32 }
 0x993   :  { %v1324_v28 = vadd.f32 %v1577_v47, %v1316_v33 }
 0x995   :  { %v1325_v34 = vpack.c.bf16 %v1324_v28, %v1323_v49 }
 0x997   :  { %1760 = vmatmul.mubr.msk.bf16.vlgmr.msra.gmra.mrb[40].mxu0 %vm196_vm0, %v1325_v34 }
 0xa6a   :  { %v1386_v45 = vpop.f32.mrb[40].mxu0 }
 0xa6b   :  { %v1387_v48 = vadd.f32 %v1578_v42, %v1386_v45  ;;  %v1761_v51 = vpop.f32.mrb[41].mxu0 }
 0xa6c   :  { %v1389_v52 = vpop.f32.mrb[42].mxu0 }
 0xa6d   :  { %v1395_v53 = vmul.f32 0.70710677, %v1387_v48  ;;  %v1390_v54 = vadd.f32 %v1578_v42, %v1389_v52  ;;  %v1762_v55 = vpop.f32.mrb[43].mxu0  ;;  %v1393_v59 = vmul.f32 0.5, %v1387_v48 }
 0xa6f   :  { %1862 = verf.f32 %v1395_v53  ;;  %v1396_v56 = vmul.f32 0.70710677, %v1390_v54  ;;  %v1394_v60 = vmul.f32 0.5, %v1390_v54 }
 0xa71   :  { %1864 = verf.f32 %v1396_v56 }
 0xa79   :  { %v1863_v57 = vpop.eup %1862 }
 0xa7a   :  { %v1399_v58 = vadd.f32 1.0, %v1863_v57 }
 0xa7b   :  { %v1865_v50 = vpop.eup %1864 }
 0xa7c   :  { %v1400_v61 = vadd.f32 1.0, %v1865_v50  ;;  %v1401_v15 = vmul.f32 %v1399_v58, %v1393_v59 }
 0xa7e   :  { %v1402_v62 = vmul.f32 %v1400_v61, %v1394_v60 }
 0xa80   :  { %v1403_v43 = vpack.c.bf16 %v1402_v62, %v1401_v15 }
 0xa82   :  { %1780 = vmatmul.mubr.bf16.vlgmr.msra.gmra.mrb[32].mxu1 %v1403_v43 }
 0xb55   :  { %v1509_v44 = vpop.f32.mrb[32].mxu1 }
 0xb56   :  { %v1510_v63 = vadd.f32 %v1582_v39, %v1509_v44  ;;  %v1781_v3 = vpop.f32.mrb[33].mxu1 }
 0xb57   :  { %v1512_v4 = vpop.f32.mrb[34].mxu1 }
 0xb58   :  { %v1516_v6 = vadd.f32 %v1510_v63, %v2651_v2  ;;  %v1513_v7 = vadd.f32 %v1582_v39, %v1512_v4  ;;  %v1782_v8 = vpop.f32.mrb[35].mxu1 }
 0xb5a   :  { %1518 = vst.msk [vmem:[#allocation22] sm:$0xff] %vm196_vm0, %v1516_v6  ;;  %v1517_v9 = vadd.f32 %v1513_v7, %v2654_v5 }
 0xb5c   :  { %1519 = vst.msk [vmem:[#allocation22 + $0x8] sm:$0xff] %vm196_vm0, %v1517_v9 }
 0xb5d   :  { %2141 = shalt.err (!%p2138_p2)
}
 0xb5e   :  { %s2142_s4 = scalar_lea.hbm %s2704_s12, 256 }
 0xb5f   :  { %p2143_p3 = scmp.ne.s32.totalorder %s2704_s12, %s2142_s4  ;;  %p2146_p4 = scmp.lt.u32.totalorder %s2142_s4, %s2704_s12 }
 0xb61   :  { %p2148_p5 = pnand %p2146_p4, %p2143_p3 }
 0xb63   :  { %2151 = shalt.err (!%p2148_p5)
}
 0xb64   :  { %1531 = dma.vmem_to_hbm [thread:$0]  %s1526_s3, 256, %s2704_s12, [#allocation4], %s2176_s9, %s2176_s9, %s2177_s21  }
 0xb65   :  { %2166 = dma.done.wait [#allocation4], 256  }
 0xb66   :  { %2167 = vsyncadd [#allocation4], 4294967040 }
 0xb67   :  { %1535 = vsyncpa [#allocation3], 1 }
 0xb68   :  { %1536 = vsyncpa [#allocation6], 1 }
 0xb69   :  { %1537 = vsyncpa [#allocation9], 1 }
 0xb6a   :  { %1538 = vsyncpa [#allocation12], 1 }
 0xb6b   :  { %1539 = vsyncpa [#allocation15], 1 }
 0xb6c   :  { %1540 = vsyncpa [#allocation18], 1 }
 0xb6d   :  { %1541 = vsyncpa [#allocation21], 1 }
 0xb6e   :  { %1542 = vsyncpa [#allocation4], 1 }

</bundles_post_ra>
